<compile_context>
chip_gen: v6e
topology: v6e:2x2x1
jax: 0.10.0
libtpu: 0.0.40
codegen_flags: <defaults>
</compile_context>

<pallas_src>
import numpy as np
import jax
import jax.numpy as jnp
from jax import lax
from jax.experimental import pallas as pl
from jax.experimental.pallas import tpu as pltpu


# ----------------------------------------------------------------------------
# Fused kernel: conv3x3(im2col matmul, M=B*N) + BN + ReLU + per-batch PAM/CAM + blend.
# Single invocation, no grid.
# ----------------------------------------------------------------------------
def _make_dahead_kernel(batch, n_pix):
    def kernel(patch_ref, wconv_ref, scale_ref, shift_ref,
               wqk_ref, bqk_ref, wv_ref, bv_ref, coef_ref, out_ref):
        # ---- conv_in: 3x3 conv as one im2col matmul over all B*N rows (bf16 MXU) ----
        y = jnp.dot(patch_ref[...], wconv_ref[...],            # (B*N, Kpad)@(Kpad, Ci)
                    preferred_element_type=jnp.float32)
        x = jnp.maximum(y * scale_ref[...] + shift_ref[...], 0.0)   # BN affine + ReLU (f32)

        c_sa = coef_ref[0]          # alpha * gamma_pam
        c_sc = coef_ref[1]          # beta  * gamma_cam
        c_x = coef_ref[2]           # 1 + alpha + beta

        # Per-batch attention on sublane-aligned 64-row slices (unrolled).
        for b in range(batch):
            lo, hi = b * n_pix, (b + 1) * n_pix
            x_b = x[lo:hi, :]                                  # (N, Ci) f32
            xb_b = x_b.astype(jnp.bfloat16)

            # ---- PAM (position attention), Wqk-folded: energy = (x Wqk + cb) x^T ----
            t_b = jnp.dot(xb_b, wqk_ref[...],
                          preferred_element_type=jnp.float32) + bqk_ref[...]
            v_b = jnp.dot(xb_b, wv_ref[...],
                          preferred_element_type=jnp.float32) + bv_ref[...]
            energy = lax.dot_general(t_b.astype(jnp.bfloat16), xb_b,
                                     (((1,), (1,)), ((), ())),
                                     preferred_element_type=jnp.float32)     # (N, N)
            e = jnp.exp(energy - jnp.max(energy, axis=-1, keepdims=True))    # energy dies here
            attn = (e * pl.reciprocal(jnp.sum(e, axis=-1, keepdims=True),
                                      approx=True)).astype(jnp.bfloat16)
            sa = jnp.dot(attn, v_b.astype(jnp.bfloat16),
                         preferred_element_type=jnp.float32)                 # (N, Ci)

            # ---- CAM (channel attention) ----
            ec = lax.dot_general(xb_b, xb_b, (((0,), (0,)), ((), ())),
                                 preferred_element_type=jnp.float32)         # (Ci, Ci)
            ecn = jnp.max(ec, axis=-1, keepdims=True) - ec
            ee = jnp.exp(ecn - jnp.max(ecn, axis=-1, keepdims=True))
            attn_c = (ee * pl.reciprocal(jnp.sum(ee, axis=-1, keepdims=True),
                                         approx=True)).astype(jnp.bfloat16)
            # sc[n, c1] = sum_{c2} x[n, c2] * attn_c[c1, c2]
            sc = lax.dot_general(xb_b, attn_c, (((1,), (1,)), ((), ())),
                                 preferred_element_type=jnp.float32)         # (N, Ci)

            # ---- folded blend, stored to the batch's sublane-aligned row block ----
            out_ref[lo:hi, :] = (c_sa * sa + c_sc * sc + c_x * x_b).astype(out_ref.dtype)

    return kernel


def dahead_pallas(patches, wconv, scale, shift, wqk, bqk, wv, bv, coefs, *, batch, n_pix):
    m, _ = patches.shape
    ci = wconv.shape[1]
    vmem_spec = lambda: pl.BlockSpec(memory_space=pltpu.MemorySpace.VMEM)
    return pl.pallas_call(
        _make_dahead_kernel(batch, n_pix),
        out_shape=jax.ShapeDtypeStruct((m, ci), jnp.float32),
        in_specs=[vmem_spec() for _ in range(8)]
                 + [pl.BlockSpec(memory_space=pltpu.MemorySpace.SMEM)],
        out_specs=vmem_spec(),
    )(patches, wconv, scale, shift, wqk, bqk, wv, bv, coefs)


# ----------------------------------------------------------------------------
# Glue: im2col (bf16, K padded to a 128 multiple), weight folding, full forward
# ----------------------------------------------------------------------------
def dahead_forward(x_nchw, p):
    B, Cin, H, W = x_nchw.shape
    N = H * W
    Ci = p["conv_w"].shape[0]                  # inter_channels
    Cq = p["q_w"].shape[0]
    K = 9 * Cin
    Kpad = ((K + 127) // 128) * 128            # 576 -> 640: no ragged K tail on the MXU

    # im2col in bf16 (halves HBM bytes), zero block appended for the K pad.
    x_nhwc = jnp.transpose(x_nchw, (0, 2, 3, 1)).astype(jnp.bfloat16)
    xp = jnp.pad(x_nhwc, ((0, 0), (1, 1), (1, 1), (0, 0)))
    cols = [xp[:, dy:dy + H, dx:dx + W, :] for dy in range(3) for dx in range(3)]
    if Kpad > K:
        cols.append(jnp.zeros((B, H, W, Kpad - K), jnp.bfloat16))
    patches = jnp.concatenate(cols, axis=-1).reshape(B * N, Kpad)     # (B*N, Kpad)

    wconv = jnp.transpose(p["conv_w"], (2, 3, 1, 0)).reshape(K, Ci)
    wconv = jnp.pad(wconv, ((0, Kpad - K), (0, 0))).astype(jnp.bfloat16)

    # folded eval-mode BN affine (f32)
    inv_std = 1.0 / jnp.sqrt(p["bn_var"] + 1e-5)
    scale = (p["bn_w"] * inv_std)[None, :]
    shift = (p["bn_b"] - p["bn_mean"] * p["bn_w"] * inv_std)[None, :]

    # PAM weight folds: energy == (x Wqk + x (Wk bq)) x^T up to softmax-invariant
    # row constants (the q-row bias and bq.bk terms cancel under row-wise softmax).
    wq = p["q_w"].reshape(Cq, Ci).T                                   # (Ci, Cq)
    wk = p["k_w"].reshape(Cq, Ci).T                                   # (Ci, Cq)
    wqk = jnp.dot(wq, wk.T, precision=lax.Precision.HIGHEST).astype(jnp.bfloat16)
    bqk = jnp.dot(wk, p["q_b"], precision=lax.Precision.HIGHEST)[None, :]    # (1, Ci) f32
    wv = p["v_w"].reshape(Ci, Ci).T.astype(jnp.bfloat16)
    bv = p["v_b"][None, :]

    # folded blend coefficients -> SMEM
    coefs = jnp.stack([p["alpha"] * p["gamma_pam"],
                       p["beta"] * p["gamma_cam"],
                       1.0 + p["alpha"] + p["beta"]]).astype(jnp.float32)

    out = dahead_pallas(patches, wconv, scale, shift, wqk, bqk, wv, bv, coefs,
                        batch=B, n_pix=N)                             # (B*N, Ci)
    return jnp.transpose(out.reshape(B, H, W, Ci), (0, 3, 1, 2))


# ----------------------------------------------------------------------------
# Pure-JAX f32 reference for verification
# ----------------------------------------------------------------------------
def dahead_reference(x_nchw, p):
    B, Cin, H, W = x_nchw.shape
    y = lax.conv_general_dilated(
        x_nchw, p["conv_w"], (1, 1), "SAME",
        dimension_numbers=("NCHW", "OIHW", "NCHW"),
        precision=lax.Precision.HIGHEST)
    inv_std = 1.0 / jnp.sqrt(p["bn_var"] + 1e-5)
    y = y * (p["bn_w"] * inv_std)[None, :, None, None] + \
        (p["bn_b"] - p["bn_mean"] * p["bn_w"] * inv_std)[None, :, None, None]
    y = jnp.maximum(y, 0.0)
    C = y.shape[1]
    x1 = jnp.transpose(y, (0, 2, 3, 1)).reshape(B, H * W, C)          # (B, N, C)

    wq = p["q_w"].reshape(p["q_w"].shape[0], -1).T
    wk = p["k_w"].reshape(p["k_w"].shape[0], -1).T
    wv = p["v_w"].reshape(p["v_w"].shape[0], -1).T
    hi = lax.Precision.HIGHEST
    q = jnp.einsum("bnc,cq->bnq", x1, wq, precision=hi) + p["q_b"]
    k = jnp.einsum("bnc,cq->bnq", x1, wk, precision=hi) + p["k_b"]
    v = jnp.einsum("bnc,cd->bnd", x1, wv, precision=hi) + p["v_b"]
    energy = jnp.einsum("bnq,bmq->bnm", q, k, precision=hi)
    attn = jax.nn.softmax(energy, axis=-1)
    sa = jnp.einsum("bnm,bmc->bnc", attn, v, precision=hi)

    ec = jnp.einsum("bnc,bnd->bcd", x1, x1, precision=hi)
    ec_new = jnp.max(ec, axis=-1, keepdims=True) - ec
    attn_c = jax.nn.softmax(ec_new, axis=-1)
    sc = jnp.einsum("bnc,bdc->bnd", x1, attn_c, precision=hi)

    sa_feat = p["gamma_pam"] * sa + x1
    sc_feat = p["gamma_cam"] * sc + x1
    out = p["alpha"] * sa_feat + p["beta"] * sc_feat + x1
    return jnp.transpose(out.reshape(B, H, W, C), (0, 3, 1, 2))


# ----------------------------------------------------------------------------
def init_params(key, in_channels):
    inter = in_channels // 4
    cq = inter // 8
    ks = jax.random.split(key, 10)
    return {
        "conv_w": 0.05 * jax.random.normal(ks[0], (inter, in_channels, 3, 3), jnp.float32),
        "bn_w": 1.0 + 0.1 * jax.random.normal(ks[1], (inter,), jnp.float32),
        "bn_b": 0.1 * jax.random.normal(ks[2], (inter,), jnp.float32),
        "bn_mean": jnp.zeros((inter,), jnp.float32),
        "bn_var": jnp.ones((inter,), jnp.float32),
        "q_w": 0.1 * jax.random.normal(ks[3], (cq, inter, 1, 1), jnp.float32),
        "q_b": 0.05 * jax.random.normal(ks[6], (cq,), jnp.float32),
        "k_w": 0.1 * jax.random.normal(ks[4], (cq, inter, 1, 1), jnp.float32),
        "k_b": 0.05 * jax.random.normal(ks[7], (cq,), jnp.float32),
        "v_w": 0.1 * jax.random.normal(ks[5], (inter, inter, 1, 1), jnp.float32),
        "v_b": 0.05 * jax.random.normal(ks[8], (inter,), jnp.float32),
        # PyTorch initializes these to 0; nonzero here so attention paths are exercised.
        "gamma_pam": jnp.float32(0.5),
        "gamma_cam": jnp.float32(0.5),
        "alpha": jnp.float32(0.3),
        "beta": jnp.float32(0.2),
    }


if __name__ == "__main__":
    key = jax.random.PRNGKey(0)
    k_x, k_p = jax.random.split(key)

    B, Cin, H, W = 2, 64, 8, 8                                    # x: [2, 64, 8, 8]
    x = jax.random.normal(k_x, (B, Cin, H, W), jnp.float32)
    params = init_params(k_p, Cin)

    fwd = jax.jit(dahead_forward)
    out = jax.block_until_ready(fwd(x, params))
    ref = jax.block_until_ready(dahead_reference(x, params))

    assert out.shape == (B, Cin // 4, H, W), out.shape
    # Tolerance covers bf16 MXU operands (f32 accumulation) and the approximate
    # EUP reciprocal in the softmax normalizations.
    np.testing.assert_allclose(np.asarray(out), np.asarray(ref), rtol=2e-2, atol=2e-2)
    print("KERNEL_OK")
</pallas_src>

<mosaic_0001>
module attributes {stable_mosaic.version = 11 : i64} {
  func.func @kernel(%arg0: memref<128x640xbf16, #tpu.memory_space<vmem>>, %arg1: memref<640x16xbf16, #tpu.memory_space<vmem>>, %arg2: memref<1x16xf32, #tpu.memory_space<vmem>>, %arg3: memref<1x16xf32, #tpu.memory_space<vmem>>, %arg4: memref<16x16xbf16, #tpu.memory_space<vmem>>, %arg5: memref<1x16xf32, #tpu.memory_space<vmem>>, %arg6: memref<16x16xbf16, #tpu.memory_space<vmem>>, %arg7: memref<1x16xf32, #tpu.memory_space<vmem>>, %arg8: memref<3xf32, #tpu.memory_space<smem>>, %arg9: memref<128x16xf32, #tpu.memory_space<vmem>>) attributes {dimension_semantics = [], scalar_prefetch = 0 : i64, scratch_operands = 0 : i64, tpu.core_type = #tpu.core_type<tc>} {
    %c0 = arith.constant 0 : index
    %c0_0 = arith.constant 0 : index
    %0 = vector.load %arg0[%c0, %c0_0] : memref<128x640xbf16, #tpu.memory_space<vmem>>, vector<128x640xbf16>
    %c0_1 = arith.constant 0 : index
    %c0_2 = arith.constant 0 : index
    %1 = vector.load %arg1[%c0_1, %c0_2] : memref<640x16xbf16, #tpu.memory_space<vmem>>, vector<640x16xbf16>
    %cst = arith.constant dense<0.000000e+00> : vector<128x16xf32>
    %2 = tpu.matmul %0, %1, %cst {dimension_numbers = #tpu.dot_dimension_numbers<[1], [0], [0], [1], [0, 0, 1, 1], [], []>} : vector<128x640xbf16>, vector<640x16xbf16>, vector<128x16xf32> -> vector<128x16xf32>
    %c0_3 = arith.constant 0 : index
    %c0_4 = arith.constant 0 : index
    %3 = vector.load %arg2[%c0_3, %c0_4] : memref<1x16xf32, #tpu.memory_space<vmem>>, vector<1x16xf32>
    %4 = vector.broadcast %3 : vector<1x16xf32> to vector<128x16xf32>
    %5 = arith.mulf %2, %4 : vector<128x16xf32>
    %c0_5 = arith.constant 0 : index
    %c0_6 = arith.constant 0 : index
    %6 = vector.load %arg3[%c0_5, %c0_6] : memref<1x16xf32, #tpu.memory_space<vmem>>, vector<1x16xf32>
    %7 = vector.broadcast %6 : vector<1x16xf32> to vector<128x16xf32>
    %8 = arith.addf %5, %7 : vector<128x16xf32>
    %cst_7 = arith.constant 0.000000e+00 : f32
    %9 = vector.broadcast %cst_7 : f32 to vector<128x16xf32>
    %10 = arith.maximumf %8, %9 : vector<128x16xf32>
    %c0_8 = arith.constant 0 : index
    %11 = memref.load %arg8[%c0_8] : memref<3xf32, #tpu.memory_space<smem>>
    %c1 = arith.constant 1 : index
    %12 = memref.load %arg8[%c1] : memref<3xf32, #tpu.memory_space<smem>>
    %c2 = arith.constant 2 : index
    %13 = memref.load %arg8[%c2] : memref<3xf32, #tpu.memory_space<smem>>
    %14 = vector.extract_strided_slice %10 {offsets = [0, 0], sizes = [64, 16], strides = [1, 1]} : vector<128x16xf32> to vector<64x16xf32>
    %15 = arith.truncf %14 : vector<64x16xf32> to vector<64x16xbf16>
    %c0_9 = arith.constant 0 : index
    %c0_10 = arith.constant 0 : index
    %16 = vector.load %arg4[%c0_9, %c0_10] : memref<16x16xbf16, #tpu.memory_space<vmem>>, vector<16x16xbf16>
    %cst_11 = arith.constant dense<0.000000e+00> : vector<64x16xf32>
    %17 = tpu.matmul %15, %16, %cst_11 {dimension_numbers = #tpu.dot_dimension_numbers<[1], [0], [0], [1], [0, 0, 1, 1], [], []>} : vector<64x16xbf16>, vector<16x16xbf16>, vector<64x16xf32> -> vector<64x16xf32>
    %c0_12 = arith.constant 0 : index
    %c0_13 = arith.constant 0 : index
    %18 = vector.load %arg5[%c0_12, %c0_13] : memref<1x16xf32, #tpu.memory_space<vmem>>, vector<1x16xf32>
    %19 = vector.broadcast %18 : vector<1x16xf32> to vector<64x16xf32>
    %20 = arith.addf %17, %19 : vector<64x16xf32>
    %c0_14 = arith.constant 0 : index
    %c0_15 = arith.constant 0 : index
    %21 = vector.load %arg6[%c0_14, %c0_15] : memref<16x16xbf16, #tpu.memory_space<vmem>>, vector<16x16xbf16>
    %cst_16 = arith.constant dense<0.000000e+00> : vector<64x16xf32>
    %22 = tpu.matmul %15, %21, %cst_16 {dimension_numbers = #tpu.dot_dimension_numbers<[1], [0], [0], [1], [0, 0, 1, 1], [], []>} : vector<64x16xbf16>, vector<16x16xbf16>, vector<64x16xf32> -> vector<64x16xf32>
    %c0_17 = arith.constant 0 : index
    %c0_18 = arith.constant 0 : index
    %23 = vector.load %arg7[%c0_17, %c0_18] : memref<1x16xf32, #tpu.memory_space<vmem>>, vector<1x16xf32>
    %24 = vector.broadcast %23 : vector<1x16xf32> to vector<64x16xf32>
    %25 = arith.addf %22, %24 : vector<64x16xf32>
    %26 = arith.truncf %20 : vector<64x16xf32> to vector<64x16xbf16>
    %cst_19 = arith.constant dense<0.000000e+00> : vector<64x64xf32>
    %27 = tpu.matmul %26, %15, %cst_19 {dimension_numbers = #tpu.dot_dimension_numbers<[1], [1], [0], [0], [0, 0, 1, 0], [], []>} : vector<64x16xbf16>, vector<64x16xbf16>, vector<64x64xf32> -> vector<64x64xf32>
    %cst_20 = arith.constant dense<0xFF800000> : vector<64xf32>
    %28 = vector.multi_reduction <maximumf>, %27, %cst_20 [1] : vector<64x64xf32> to vector<64xf32>
    %29 = vector.shape_cast %28 : vector<64xf32> to vector<64x1xf32>
    %30 = vector.broadcast %29 : vector<64x1xf32> to vector<64x64xf32>
    %31 = arith.subf %27, %30 : vector<64x64xf32>
    %32 = math.exp %31 : vector<64x64xf32>
    %cst_21 = arith.constant dense<0.000000e+00> : vector<64xf32>
    %33 = vector.multi_reduction <add>, %32, %cst_21 [1] : vector<64x64xf32> to vector<64xf32>
    %34 = vector.shape_cast %33 : vector<64xf32> to vector<64x1xf32>
    %35 = tpu.reciprocal %34 {approx = true} : vector<64x1xf32> -> vector<64x1xf32>
    %36 = vector.broadcast %35 : vector<64x1xf32> to vector<64x64xf32>
    %37 = arith.mulf %32, %36 : vector<64x64xf32>
    %38 = arith.truncf %37 : vector<64x64xf32> to vector<64x64xbf16>
    %39 = arith.truncf %25 : vector<64x16xf32> to vector<64x16xbf16>
    %cst_22 = arith.constant dense<0.000000e+00> : vector<64x16xf32>
    %40 = tpu.matmul %38, %39, %cst_22 {dimension_numbers = #tpu.dot_dimension_numbers<[1], [0], [0], [1], [0, 0, 1, 1], [], []>} : vector<64x64xbf16>, vector<64x16xbf16>, vector<64x16xf32> -> vector<64x16xf32>
    %cst_23 = arith.constant dense<0.000000e+00> : vector<16x16xf32>
    %41 = tpu.matmul %15, %15, %cst_23 {dimension_numbers = #tpu.dot_dimension_numbers<[0], [0], [1], [1], [0, 1, 1, 1], [], []>} : vector<64x16xbf16>, vector<64x16xbf16>, vector<16x16xf32> -> vector<16x16xf32>
    %cst_24 = arith.constant dense<0xFF800000> : vector<16xf32>
    %42 = vector.multi_reduction <maximumf>, %41, %cst_24 [1] : vector<16x16xf32> to vector<16xf32>
    %43 = vector.shape_cast %42 : vector<16xf32> to vector<16x1xf32>
    %44 = vector.broadcast %43 : vector<16x1xf32> to vector<16x16xf32>
    %45 = arith.subf %44, %41 : vector<16x16xf32>
    %cst_25 = arith.constant dense<0xFF800000> : vector<16xf32>
    %46 = vector.multi_reduction <maximumf>, %45, %cst_25 [1] : vector<16x16xf32> to vector<16xf32>
    %47 = vector.shape_cast %46 : vector<16xf32> to vector<16x1xf32>
    %48 = vector.broadcast %47 : vector<16x1xf32> to vector<16x16xf32>
    %49 = arith.subf %45, %48 : vector<16x16xf32>
    %50 = math.exp %49 : vector<16x16xf32>
    %cst_26 = arith.constant dense<0.000000e+00> : vector<16xf32>
    %51 = vector.multi_reduction <add>, %50, %cst_26 [1] : vector<16x16xf32> to vector<16xf32>
    %52 = vector.shape_cast %51 : vector<16xf32> to vector<16x1xf32>
    %53 = tpu.reciprocal %52 {approx = true} : vector<16x1xf32> -> vector<16x1xf32>
    %54 = vector.broadcast %53 : vector<16x1xf32> to vector<16x16xf32>
    %55 = arith.mulf %50, %54 : vector<16x16xf32>
    %56 = arith.truncf %55 : vector<16x16xf32> to vector<16x16xbf16>
    %cst_27 = arith.constant dense<0.000000e+00> : vector<64x16xf32>
    %57 = tpu.matmul %15, %56, %cst_27 {dimension_numbers = #tpu.dot_dimension_numbers<[1], [1], [0], [0], [0, 0, 1, 0], [], []>} : vector<64x16xbf16>, vector<16x16xbf16>, vector<64x16xf32> -> vector<64x16xf32>
    %58 = vector.broadcast %11 : f32 to vector<64x16xf32>
    %59 = arith.mulf %58, %40 : vector<64x16xf32>
    %60 = vector.broadcast %12 : f32 to vector<64x16xf32>
    %61 = arith.mulf %60, %57 : vector<64x16xf32>
    %62 = arith.addf %59, %61 : vector<64x16xf32>
    %63 = vector.broadcast %13 : f32 to vector<64x16xf32>
    %64 = arith.mulf %63, %14 : vector<64x16xf32>
    %65 = arith.addf %62, %64 : vector<64x16xf32>
    %c0_28 = arith.constant 0 : index
    %c0_29 = arith.constant 0 : index
    %66 = vector.load %arg9[%c0_28, %c0_29] : memref<128x16xf32, #tpu.memory_space<vmem>>, vector<64x16xf32>
    tpu.vector_store %arg9[%c0_28, %c0_29], %65 {strides = array<i32>} : memref<128x16xf32, #tpu.memory_space<vmem>>, vector<64x16xf32>,
    %67 = vector.extract_strided_slice %10 {offsets = [64, 0], sizes = [64, 16], strides = [1, 1]} : vector<128x16xf32> to vector<64x16xf32>
    %68 = arith.truncf %67 : vector<64x16xf32> to vector<64x16xbf16>
    %c0_30 = arith.constant 0 : index
    %c0_31 = arith.constant 0 : index
    %69 = vector.load %arg4[%c0_30, %c0_31] : memref<16x16xbf16, #tpu.memory_space<vmem>>, vector<16x16xbf16>
    %cst_32 = arith.constant dense<0.000000e+00> : vector<64x16xf32>
    %70 = tpu.matmul %68, %69, %cst_32 {dimension_numbers = #tpu.dot_dimension_numbers<[1], [0], [0], [1], [0, 0, 1, 1], [], []>} : vector<64x16xbf16>, vector<16x16xbf16>, vector<64x16xf32> -> vector<64x16xf32>
    %c0_33 = arith.constant 0 : index
    %c0_34 = arith.constant 0 : index
    %71 = vector.load %arg5[%c0_33, %c0_34] : memref<1x16xf32, #tpu.memory_space<vmem>>, vector<1x16xf32>
    %72 = vector.broadcast %71 : vector<1x16xf32> to vector<64x16xf32>
    %73 = arith.addf %70, %72 : vector<64x16xf32>
    %c0_35 = arith.constant 0 : index
    %c0_36 = arith.constant 0 : index
    %74 = vector.load %arg6[%c0_35, %c0_36] : memref<16x16xbf16, #tpu.memory_space<vmem>>, vector<16x16xbf16>
    %cst_37 = arith.constant dense<0.000000e+00> : vector<64x16xf32>
    %75 = tpu.matmul %68, %74, %cst_37 {dimension_numbers = #tpu.dot_dimension_numbers<[1], [0], [0], [1], [0, 0, 1, 1], [], []>} : vector<64x16xbf16>, vector<16x16xbf16>, vector<64x16xf32> -> vector<64x16xf32>
    %c0_38 = arith.constant 0 : index
    %c0_39 = arith.constant 0 : index
    %76 = vector.load %arg7[%c0_38, %c0_39] : memref<1x16xf32, #tpu.memory_space<vmem>>, vector<1x16xf32>
    %77 = vector.broadcast %76 : vector<1x16xf32> to vector<64x16xf32>
    %78 = arith.addf %75, %77 : vector<64x16xf32>
    %79 = arith.truncf %73 : vector<64x16xf32> to vector<64x16xbf16>
    %cst_40 = arith.constant dense<0.000000e+00> : vector<64x64xf32>
    %80 = tpu.matmul %79, %68, %cst_40 {dimension_numbers = #tpu.dot_dimension_numbers<[1], [1], [0], [0], [0, 0, 1, 0], [], []>} : vector<64x16xbf16>, vector<64x16xbf16>, vector<64x64xf32> -> vector<64x64xf32>
    %cst_41 = arith.constant dense<0xFF800000> : vector<64xf32>
    %81 = vector.multi_reduction <maximumf>, %80, %cst_41 [1] : vector<64x64xf32> to vector<64xf32>
    %82 = vector.shape_cast %81 : vector<64xf32> to vector<64x1xf32>
    %83 = vector.broadcast %82 : vector<64x1xf32> to vector<64x64xf32>
    %84 = arith.subf %80, %83 : vector<64x64xf32>
    %85 = math.exp %84 : vector<64x64xf32>
    %cst_42 = arith.constant dense<0.000000e+00> : vector<64xf32>
    %86 = vector.multi_reduction <add>, %85, %cst_42 [1] : vector<64x64xf32> to vector<64xf32>
    %87 = vector.shape_cast %86 : vector<64xf32> to vector<64x1xf32>
    %88 = tpu.reciprocal %87 {approx = true} : vector<64x1xf32> -> vector<64x1xf32>
    %89 = vector.broadcast %88 : vector<64x1xf32> to vector<64x64xf32>
    %90 = arith.mulf %85, %89 : vector<64x64xf32>
    %91 = arith.truncf %90 : vector<64x64xf32> to vector<64x64xbf16>
    %92 = arith.truncf %78 : vector<64x16xf32> to vector<64x16xbf16>
    %cst_43 = arith.constant dense<0.000000e+00> : vector<64x16xf32>
    %93 = tpu.matmul %91, %92, %cst_43 {dimension_numbers = #tpu.dot_dimension_numbers<[1], [0], [0], [1], [0, 0, 1, 1], [], []>} : vector<64x64xbf16>, vector<64x16xbf16>, vector<64x16xf32> -> vector<64x16xf32>
    %cst_44 = arith.constant dense<0.000000e+00> : vector<16x16xf32>
    %94 = tpu.matmul %68, %68, %cst_44 {dimension_numbers = #tpu.dot_dimension_numbers<[0], [0], [1], [1], [0, 1, 1, 1], [], []>} : vector<64x16xbf16>, vector<64x16xbf16>, vector<16x16xf32> -> vector<16x16xf32>
    %cst_45 = arith.constant dense<0xFF800000> : vector<16xf32>
    %95 = vector.multi_reduction <maximumf>, %94, %cst_45 [1] : vector<16x16xf32> to vector<16xf32>
    %96 = vector.shape_cast %95 : vector<16xf32> to vector<16x1xf32>
    %97 = vector.broadcast %96 : vector<16x1xf32> to vector<16x16xf32>
    %98 = arith.subf %97, %94 : vector<16x16xf32>
    %cst_46 = arith.constant dense<0xFF800000> : vector<16xf32>
    %99 = vector.multi_reduction <maximumf>, %98, %cst_46 [1] : vector<16x16xf32> to vector<16xf32>
    %100 = vector.shape_cast %99 : vector<16xf32> to vector<16x1xf32>
    %101 = vector.broadcast %100 : vector<16x1xf32> to vector<16x16xf32>
    %102 = arith.subf %98, %101 : vector<16x16xf32>
    %103 = math.exp %102 : vector<16x16xf32>
    %cst_47 = arith.constant dense<0.000000e+00> : vector<16xf32>
    %104 = vector.multi_reduction <add>, %103, %cst_47 [1] : vector<16x16xf32> to vector<16xf32>
    %105 = vector.shape_cast %104 : vector<16xf32> to vector<16x1xf32>
    %106 = tpu.reciprocal %105 {approx = true} : vector<16x1xf32> -> vector<16x1xf32>
    %107 = vector.broadcast %106 : vector<16x1xf32> to vector<16x16xf32>
    %108 = arith.mulf %103, %107 : vector<16x16xf32>
    %109 = arith.truncf %108 : vector<16x16xf32> to vector<16x16xbf16>
    %cst_48 = arith.constant dense<0.000000e+00> : vector<64x16xf32>
    %110 = tpu.matmul %68, %109, %cst_48 {dimension_numbers = #tpu.dot_dimension_numbers<[1], [1], [0], [0], [0, 0, 1, 0], [], []>} : vector<64x16xbf16>, vector<16x16xbf16>, vector<64x16xf32> -> vector<64x16xf32>
    %111 = vector.broadcast %11 : f32 to vector<64x16xf32>
    %112 = arith.mulf %111, %93 : vector<64x16xf32>
    %113 = vector.broadcast %12 : f32 to vector<64x16xf32>
    %114 = arith.mulf %113, %110 : vector<64x16xf32>
    %115 = arith.addf %112, %114 : vector<64x16xf32>
    %116 = vector.broadcast %13 : f32 to vector<64x16xf32>
    %117 = arith.mulf %116, %67 : vector<64x16xf32>
    %118 = arith.addf %115, %117 : vector<64x16xf32>
    %c64 = arith.constant 64 : index
    %c0_49 = arith.constant 0 : index
    %119 = vector.load %arg9[%c64, %c0_49] : memref<128x16xf32, #tpu.memory_space<vmem>>, vector<64x16xf32>
    tpu.vector_store %arg9[%c64, %c0_49], %118 {strides = array<i32>} : memref<128x16xf32, #tpu.memory_space<vmem>>, vector<64x16xf32>,
    return
  }
}

</mosaic_0001>

<bundles_post_ra>
// kernel: dahead_forward.1
= control target key start
LH: loop header
LB: loop body
LE: loop exit
PB: predicated region body
PF: predicated region fallthrough
CT: control target
= control target key end

     0   :  { %14 = vsyncpa [#allocation4], 0  ;;  %s3966_s0 = inlined_call_operand.vmem [shape: bf16[128,640], index: 0, kind: input, shape index: {}]   ;;  %s3967_s1 = inlined_call_operand.vmem [shape: bf16[640,16], index: 1, kind: input, shape index: {}]   ;;  %s3968_s2 = inlined_call_operand.vmem [shape: f32[1,16], index: 2, kind: input, shape index: {}]   ;;  %s3969_s3 = inlined_call_operand.vmem [shape: f32[1,16], index: 3, kind: input, shape index: {}]   ;;  %s3970_s4 = inlined_call_operand.vmem [shape: bf16[16,16], index: 4, kind: input, shape index: {}]   ;;  %s3971_s5 = inlined_call_operand.vmem [shape: f32[1,16], index: 5, kind: input, shape index: {}]   ;;  %s3972_s6 = inlined_call_operand.vmem [shape: bf16[16,16], index: 6, kind: input, shape index: {}]   ;;  %s3973_s7 = inlined_call_operand.vmem [shape: f32[1,16], index: 7, kind: input, shape index: {}]   ;;  %s3974_s8 = inlined_call_operand.vmem [shape: f32[3], index: 8, kind: input, shape index: {}]   ;;  %s3975_s9 = inlined_call_operand.hbm [shape: f32[128,16], index: 9, kind: output, shape index: {}]  }
   0x1   :  { %15 = vsyncpa [#allocation3], 0  ;;  %s38_s11 = sshll.u32 %s3974_s8, 4  ;;  %s39_s11 = int_to_ptr.vmem [resolvable:$true] %s38_s11 }
   0x2   :  { %s3002_s12 = scalar_lea.vmem %s39_s11, 16  ;;  %p3007_p1 = scmp.lt.s32.totalorder %s39_s11, %s39_s11 }
   0x3   :  { %p3003_p0 = scmp.ne.s32.totalorder %s39_s11, %s3002_s12  ;;  %p3008_p2 = scmp.lt.s32.totalorder %s3002_s12, %s3002_s12 }
   0x5   :  { %p3009_p3 = por %p3008_p2, %p3007_p1 }
   0x7   :  { %p3010_p4 = pnand %p3009_p3, %p3003_p0 }
   0x9   :  { %3013 = shalt.err (!%p3010_p4)
}
   0xa   :  { %s3038_s13 = smov [#allocation2]  }
   0xb   :  { %41 = dma.vmem_to_smem %s39_s11, 16, %s3038_s13, [#allocation4]  }
   0xc   :  { %3034 = dma.done.wait [#allocation4], 16  }
   0xd   :  { %3035 = vsyncadd [#allocation4], 4294967280 }
   0xe   :  { %45 = sfence }
   0xf   :  { %v2822_v0 = vld [vmem:[%s3967_s1 + $0x78] sm:$0xff]   ;;  %v2826_v4 = vld [vmem:[%s3967_s1 + $0x70] sm:$0xff]   ;;  %v2830_v8 = vld [vmem:[%s3967_s1 + $0x68] sm:$0xff]   ;;  %vm998_vm0 = vcmask 130048   ;;  %vm1237_vm1 = vcmask 523264   ;;  %vm3040_vm2 = vmmov 0  }
  0x10   :  { %v2823_v1 = vld [vmem:[%s3967_s1 + $0xf8] sm:$0xff]   ;;  %2409 = vmatprep.subr.bf16.mxu0 %v2822_v0  ;;  %v2827_v5 = vld [vmem:[%s3967_s1 + $0xf0] sm:$0xff]   ;;  %v2831_v9 = vld [vmem:[%s3967_s1 + $0xe8] sm:$0xff]   ;;  %s2357_s27 = sld [smem:[#allocation2 + $0x1]]  ;;  %s3041_s28 = smov [#allocation5]  }
  0x11   :  { %v2824_v2 = vld [vmem:[%s3967_s1 + $0x38] sm:$0xff]   ;;  %2473 = vmatprep.subr.bf16.mxu1 %v2823_v1  ;;  %v2828_v6 = vld [vmem:[%s3967_s1 + $0x30] sm:$0xff]   ;;  %v2832_v10 = vld [vmem:[%s3967_s1 + $0x28] sm:$0xff]   ;;  %s2263_s29 = sshll.u32 %s3041_s28, 4  ;;  %s2264_s29 = int_to_ptr.vmem [resolvable:$true] %s2263_s29 }
  0x12   :  { %v2825_v3 = vld [vmem:[%s3967_s1 + $0xb8] sm:$0xff]   ;;  %2410 = vmatpush3.bf16.msra.mxu0 %v2824_v2  ;;  %v2829_v7 = vld [vmem:[%s3967_s1 + $0xb0] sm:$0xff]   ;;  %v2833_v11 = vld [vmem:[%s3967_s1 + $0xa8] sm:$0xff]   ;;  %s3014_s30 = scalar_lea.vmem %s2264_s29, 2048  ;;  %p3019_p6 = scmp.lt.s32.totalorder %s2264_s29, %s2264_s29 }
  0x13   :  { %2474 = vmatpush3.bf16.msra.mxu1 %v2825_v3  ;;  %2411 = vmatprep.subr.bf16.mxu0 %v2826_v4  ;;  %v2834_v12 = vld [vmem:[%s3967_s1 + $0x60] sm:$0xff]   ;;  %v2838_v16 = vld [vmem:[%s3967_s1 + $0x58] sm:$0xff]   ;;  %v2842_v20 = vld [vmem:[%s3967_s1 + $0x50] sm:$0xff]   ;;  %p3015_p5 = scmp.ne.s32.totalorder %s2264_s29, %s3014_s30  ;;  %p3020_p7 = scmp.lt.s32.totalorder %s3014_s30, %s3014_s30 }
  0x14   :  { %2475 = vmatprep.subr.bf16.mxu1 %v2827_v5  ;;  %v2835_v13 = vld [vmem:[%s3967_s1 + $0xe0] sm:$0xff]   ;;  %v2839_v17 = vld [vmem:[%s3967_s1 + $0xd8] sm:$0xff]   ;;  %v2843_v21 = vld [vmem:[%s3967_s1 + $0xd0] sm:$0xff]  }
  0x15   :  { %v2836_v14 = vld [vmem:[%s3967_s1 + $0x20] sm:$0xff]   ;;  %v2840_v18 = vld [vmem:[%s3967_s1 + $0x18] sm:$0xff]   ;;  %v2844_v22 = vld [vmem:[%s3967_s1 + $0x10] sm:$0xff]   ;;  %p3021_p8 = por %p3020_p7, %p3019_p6 }
  0x16   :  { %2412 = vmatpush3.bf16.msra.mxu0 %v2828_v6  ;;  %v2837_v15 = vld [vmem:[%s3967_s1 + $0xa0] sm:$0xff]   ;;  %v2841_v19 = vld [vmem:[%s3967_s1 + $0x98] sm:$0xff]   ;;  %v2845_v23 = vld [vmem:[%s3967_s1 + $0x90] sm:$0xff]  }
  0x17   :  { %2476 = vmatpush3.bf16.msra.mxu1 %v2829_v7  ;;  %2413 = vmatprep.subr.bf16.mxu0 %v2830_v8  ;;  %v2846_v24 = vld [vmem:[%s3967_s1 + $0x48] sm:$0xff]   ;;  %v2850_v28 = vld [vmem:[%s3967_s1 + $0x40] sm:$0xff]   ;;  %v2866_v38 = vld [vmem:[%s3967_s1 + $0x138] sm:$0xff]   ;;  %p3022_p9 = pnand %p3021_p8, %p3015_p5 }
  0x18   :  { %2477 = vmatprep.subr.bf16.mxu1 %v2831_v9  ;;  %v2847_v25 = vld [vmem:[%s3967_s1 + $0xc8] sm:$0xff]   ;;  %v2851_v29 = vld [vmem:[%s3967_s1 + $0xc0] sm:$0xff]   ;;  %v2873_v42 = vld [vmem:[%s3967_s1 + $0x130] sm:$0xff]  }
  0x19   :  { %v2848_v26 = vld [vmem:[%s3967_s1 + $0x8] sm:$0xff]   ;;  %v2852_v30 = vld [vmem:[%s3967_s1] sm:$0xff]   ;;  %v2869_v43 = vld [vmem:[%s3966_s0 + $0x5c] ss:$20 sps:$4 sm:$0xff]  }
  0x1a   :  { %2414 = vmatpush3.bf16.msra.mxu0 %v2832_v10  ;;  %v2849_v27 = vld [vmem:[%s3967_s1 + $0x88] sm:$0xff]   ;;  %v2853_v31 = vld [vmem:[%s3967_s1 + $0x80] sm:$0xff]   ;;  %v2874_v47 = vld [vmem:[%s3966_s0 + $0x7c] ss:$20 sps:$4 sm:$0xff]  }
  0x1b   :  { %2478 = vmatpush3.bf16.msra.mxu1 %v2833_v11  ;;  %2415 = vmatprep.subr.bf16.mxu0 %v2834_v12  ;;  %v2854_v32 = vld [vmem:[%s3966_s0] ss:$20 sps:$4 sm:$0xff]   ;;  %v2856_v33 = vld [vmem:[%s3966_s0 + $0x4] ss:$20 sps:$4 sm:$0xff]   ;;  %v2857_v34 = vld [vmem:[%s3966_s0 + $0x8] ss:$20 sps:$4 sm:$0xff]  }
  0x1c   :  { %2479 = vmatprep.subr.bf16.mxu1 %v2835_v13  ;;  %v2859_v35 = vld [vmem:[%s3966_s0 + $0xc] ss:$20 sps:$4 sm:$0xff]   ;;  %655 = vmatprep.mubr.bf16.mxu0 %v2856_v33  ;;  %v2862_v37 = vld [vmem:[%s3966_s0 + $0x34] ss:$20 sps:$4 sm:$0xff]   ;;  %v2865_v40 = vld [vmem:[%s3966_s0 + $0x30] ss:$20 sps:$4 sm:$0xff]  }
  0x1d   :  { %v2860_v36 = vld [vmem:[%s3966_s0 + $0x2c] ss:$20 sps:$4 sm:$0xff]   ;;  %752 = vmatprep.mubr.bf16.mxu1 %v2859_v35  ;;  %v2864_v39 = vld [vmem:[%s3966_s0 + $0x28] ss:$20 sps:$4 sm:$0xff]   ;;  %v2871_v45 = vld [vmem:[%s3966_s0 + $0x50] ss:$20 sps:$4 sm:$0xff]  }
  0x1e   :  { %2416 = vmatpush3.bf16.msra.mxu0 %v2836_v14  ;;  %v2867_v41 = vld [vmem:[%s3966_s0 + $0x54] ss:$20 sps:$4 sm:$0xff]   ;;  %v2872_v46 = vld [vmem:[%s3966_s0 + $0x58] ss:$20 sps:$4 sm:$0xff]   ;;  %v2887_v48 = vld [vmem:[%s3967_s1 + $0x120] sm:$0xff]  }
  0x1f   :  { %2480 = vmatpush3.bf16.msra.mxu1 %v2837_v15  ;;  %2417 = vmatprep.subr.bf16.mxu0 %v2838_v16  ;;  %v2880_v44 = vld [vmem:[%s3967_s1 + $0x128] sm:$0xff]   ;;  %v2876_v49 = vld [vmem:[%s3966_s0 + $0x84] ss:$20 sps:$4 sm:$0xff]   ;;  %v2879_v52 = vld [vmem:[%s3966_s0 + $0x80] ss:$20 sps:$4 sm:$0xff]  }
  0x20   :  { %2481 = vmatprep.subr.bf16.mxu1 %v2839_v17  ;;  %v2894_v50 = vld [vmem:[%s3967_s1 + $0x118] sm:$0xff]   ;;  %v2901_v53 = vld [vmem:[%s3967_s1 + $0x110] sm:$0xff]   ;;  %v2883_v55 = vld [vmem:[%s3966_s0 + $0xac] ss:$20 sps:$4 sm:$0xff]  }
  0x21   :  { %v2878_v51 = vld [vmem:[%s3966_s0 + $0x78] ss:$20 sps:$4 sm:$0xff]   ;;  %v2885_v57 = vld [vmem:[%s3966_s0 + $0xa0] ss:$20 sps:$4 sm:$0xff]   ;;  %v2886_v59 = vld [vmem:[%s3966_s0 + $0xa8] ss:$20 sps:$4 sm:$0xff]  }
  0x22   :  { %2418 = vmatpush3.bf16.msra.mxu0 %v2840_v18  ;;  %v2881_v54 = vld [vmem:[%s3966_s0 + $0xa4] ss:$20 sps:$4 sm:$0xff]   ;;  %v2908_v56 = vld [vmem:[%s3967_s1 + $0x108] sm:$0xff]   ;;  %v2897_v1 = vld [vmem:[%s3966_s0 + $0xfc] ss:$20 sps:$4 sm:$0xff]  }
  0x23   :  { %2482 = vmatpush3.bf16.msra.mxu1 %v2841_v19  ;;  %2419 = vmatprep.subr.bf16.mxu0 %v2842_v20  ;;  %v2909_v58 = vld [vmem:[%s3967_s1 + $0x100] sm:$0xff]   ;;  %v2890_v61 = vld [vmem:[%s3966_s0 + $0xd4] ss:$20 sps:$4 sm:$0xff]   ;;  %v2900_v3 = vld [vmem:[%s3966_s0 + $0xf8] ss:$20 sps:$4 sm:$0xff]  }
  0x24   :  { %2483 = vmatprep.subr.bf16.mxu1 %v2843_v21  ;;  %v2888_v60 = vld [vmem:[%s3966_s0 + $0xcc] ss:$20 sps:$4 sm:$0xff]   ;;  %v2892_v62 = vld [vmem:[%s3966_s0 + $0xc8] ss:$20 sps:$4 sm:$0xff]   ;;  %v2893_v63 = vld [vmem:[%s3966_s0 + $0xd0] ss:$20 sps:$4 sm:$0xff]  }
  0x25   :  { %v2895_v0 = vld [vmem:[%s3966_s0 + $0xf4] ss:$20 sps:$4 sm:$0xff]   ;;  %v2899_v2 = vld [vmem:[%s3966_s0 + $0xf0] ss:$20 sps:$4 sm:$0xff]   ;;  %v2906_v6 = vld [vmem:[%s3966_s0 + $0x118] ss:$20 sps:$4 sm:$0xff]  }
  0x26   :  { %2420 = vmatpush3.bf16.msra.mxu0 %v2844_v22  ;;  %v2902_v4 = vld [vmem:[%s3966_s0 + $0x11c] ss:$20 sps:$4 sm:$0xff]   ;;  %v2904_v5 = vld [vmem:[%s3966_s0 + $0x124] ss:$20 sps:$4 sm:$0xff]   ;;  %v2907_v7 = vld [vmem:[%s3966_s0 + $0x120] ss:$20 sps:$4 sm:$0xff]  }
  0x27   :  { %2484 = vmatpush3.bf16.msra.mxu1 %v2845_v23  ;;  %2421 = vmatprep.subr.bf16.mxu0 %v2846_v24  ;;  %v2910_v8 = vld [vmem:[%s3966_s0 + $0x10] ss:$20 sps:$4 sm:$0xff]   ;;  %v2911_v9 = vld [vmem:[%s3966_s0 + $0x38] ss:$20 sps:$4 sm:$0xff]   ;;  %v2912_v10 = vld [vmem:[%s3966_s0 + $0x60] ss:$20 sps:$4 sm:$0xff]  }
  0x28   :  { %2485 = vmatprep.subr.bf16.mxu1 %v2847_v25  ;;  %v2913_v11 = vld [vmem:[%s3966_s0 + $0x88] ss:$20 sps:$4 sm:$0xff]   ;;  %v2914_v12 = vld [vmem:[%s3966_s0 + $0xb0] ss:$20 sps:$4 sm:$0xff]   ;;  %v2915_v13 = vld [vmem:[%s3966_s0 + $0xd8] ss:$20 sps:$4 sm:$0xff]  }
  0x29   :  { %v2916_v14 = vld [vmem:[%s3966_s0 + $0x100] ss:$20 sps:$4 sm:$0xff]   ;;  %v2917_v15 = vld [vmem:[%s3966_s0 + $0x128] ss:$20 sps:$4 sm:$0xff]  }
  0x2a   :  { %2422 = vmatpush3.bf16.msra.mxu0 %v2848_v26  ;;  %v2918_v16 = vld [vmem:[%s3970_s4] sm:$0xff]  }
  0x2b   :  { %2486 = vmatpush3.bf16.msra.mxu1 %v2849_v27  ;;  %2423 = vmatprep.subr.bf16.mxu0 %v2850_v28  ;;  %v3343_v17 = vld [vmem:[%s3972_s6] sm:$0xff]  }
  0x2c   :  { %2487 = vmatprep.subr.bf16.mxu1 %v2851_v29 }
  0x2e   :  { %2424 = vmatpush3.bf16.msra.mxu0 %v2852_v30 }
  0x2f   :  { %2488 = vmatpush3.bf16.msra.mxu1 %v2853_v31  ;;  %2625 = vmatprep.subr.bf16.mxu0 %v2866_v38 }
  0x30   :  { %2657 = vmatprep.subr.bf16.mxu1 %v2918_v16 }
  0x31   :  { %656 = vmatmul.mubr.bf16.vlgmr.msra.gmra.mxu0 %v2854_v32 }
  0x32   :  { %753 = vmatmul.mubr.bf16.vlgmr.msra.gmra.mxu1 %v2857_v34  ;;  %663 = vmatprep.mubr.bf16.mxu0 %v2860_v36 }
  0x33   :  { %760 = vmatprep.mubr.bf16.mxu1 %v2862_v37  ;;  %2626 = vmatpush3.bf16.msra.mxu0 %v2866_v38 }
  0x34   :  { %2627 = vmatprep.subr.bf16.mxu0 %v2873_v42  ;;  %2658 = vmatpush3.bf16.msra.mxu1 %v2918_v16 }
  0x35   :  { %2667 = vmatprep.subr.bf16.mxu1 %v3343_v17 }
  0x37   :  { %2628 = vmatpush3.bf16.msra.mxu0 %v2873_v42 }
  0x38   :  { %2629 = vmatprep.subr.bf16.mxu0 %v2880_v44 }
  0x39   :  { %664 = vmatmul.mubr.bf16.gmra.mxu0 %v2864_v39 }
  0x3a   :  { %761 = vmatmul.mubr.bf16.gmra.mxu1 %v2865_v40  ;;  %671 = vmatprep.mubr.bf16.mxu0 %v2867_v41 }
  0x3b   :  { %768 = vmatprep.mubr.bf16.mxu1 %v2869_v43  ;;  %2630 = vmatpush3.bf16.msra.mxu0 %v2880_v44 }
  0x3c   :  { %2631 = vmatprep.subr.bf16.mxu0 %v2887_v48 }
  0x3f   :  { %2632 = vmatpush3.bf16.msra.mxu0 %v2887_v48 }
  0x40   :  { %2633 = vmatprep.subr.bf16.mxu0 %v2894_v50 }
  0x41   :  { %672 = vmatmul.mubr.bf16.gmra.mxu0 %v2871_v45 }
  0x42   :  { %769 = vmatmul.mubr.bf16.gmra.mxu1 %v2872_v46  ;;  %679 = vmatprep.mubr.bf16.mxu0 %v2874_v47 }
  0x43   :  { %776 = vmatprep.mubr.bf16.mxu1 %v2876_v49  ;;  %2634 = vmatpush3.bf16.msra.mxu0 %v2894_v50 }
  0x44   :  { %2635 = vmatprep.subr.bf16.mxu0 %v2901_v53 }
  0x47   :  { %2636 = vmatpush3.bf16.msra.mxu0 %v2901_v53 }
  0x48   :  { %2637 = vmatprep.subr.bf16.mxu0 %v2908_v56 }
  0x49   :  { %680 = vmatmul.mubr.bf16.gmra.mxu0 %v2878_v51 }
  0x4a   :  { %777 = vmatmul.mubr.bf16.gmra.mxu1 %v2879_v52  ;;  %687 = vmatprep.mubr.bf16.mxu0 %v2881_v54 }
  0x4b   :  { %784 = vmatprep.mubr.bf16.mxu1 %v2883_v55  ;;  %2638 = vmatpush3.bf16.msra.mxu0 %v2908_v56 }
  0x4c   :  { %2639 = vmatprep.subr.bf16.mxu0 %v2909_v58 }
  0x4f   :  { %2640 = vmatpush3.bf16.msra.mxu0 %v2909_v58 }
  0x51   :  { %688 = vmatmul.mubr.bf16.gmra.mxu0 %v2885_v57 }
  0x52   :  { %785 = vmatmul.mubr.bf16.gmra.mxu1 %v2886_v59  ;;  %695 = vmatprep.mubr.bf16.mxu0 %v2888_v60 }
  0x53   :  { %792 = vmatprep.mubr.bf16.mxu1 %v2890_v61 }
  0x59   :  { %696 = vmatmul.mubr.bf16.gmra.mxu0 %v2892_v62 }
  0x5a   :  { %793 = vmatmul.mubr.bf16.gmra.mxu1 %v2893_v63  ;;  %703 = vmatprep.mubr.bf16.mxu0 %v2895_v0 }
  0x5b   :  { %800 = vmatprep.mubr.bf16.mxu1 %v2897_v1 }
  0x61   :  { %704 = vmatmul.mubr.bf16.gmra.mxu0 %v2899_v2 }
  0x62   :  { %801 = vmatmul.mubr.bf16.gmra.mxu1 %v2900_v3  ;;  %711 = vmatprep.mubr.bf16.mxu0 %v2902_v4 }
  0x63   :  { %808 = vmatprep.mubr.bf16.mxu1 %v2904_v5 }
  0x69   :  { %712 = vmatmul.mubr.bf16.gmra.mxu0 %v2906_v6 }
  0x6a   :  { %809 = vmatmul.mubr.bf16.gmra.mxu1 %v2907_v7  ;;  %2641 = vmatprep.mubr.bf16.mxu0 %v2910_v8 }
  0x71   :  { %2642 = vmatmul.mubr.bf16.vlgmr.msra.gmra.mxu0 %v2911_v9 }
  0x72   :  { %2645 = vmatprep.mubr.bf16.mxu0 %v2912_v10 }
  0x79   :  { %2646 = vmatmul.mubr.bf16.gmra.mxu0 %v2913_v11 }
  0x7a   :  { %2649 = vmatprep.mubr.bf16.mxu0 %v2914_v12 }
  0x81   :  { %2650 = vmatmul.mubr.bf16.gmra.mxu0 %v2915_v13 }
  0x82   :  { %2653 = vmatprep.mubr.bf16.mxu0 %v2916_v14 }
  0x89   :  { %2654 = vmatmul.mubr.bf16.gmra.mxu0 %v2917_v15 }
  0xf1   :  { %v2425_v18 = vpop.f32.mrf.mxu0 }
  0xf2   :  { %v3346_v19 = vpop.f32.mrf.mxu1 }
  0xf3   :  { %v2426_v20 = vpop.f32.mrf.mxu0 }
  0xf4   :  { %v3348_v21 = vadd.f32 %v2426_v20, %v2425_v18  ;;  %v3350_v22 = vpop.f32.mrf.mxu1 }
  0xf5   :  { %v3352_v23 = vpop.f32.mrf.mxu0 }
  0xf6   :  { %v3354_v24 = vpop.f32.mrf.mxu1 }
  0xf7   :  { %v3356_v25 = vpop.f32.mrf.mxu0 }
  0xf8   :  { %v3358_v26 = vpop.f32.mrf.mxu1 }
  0xf9   :  { %v2431_v27 = vpop.f32.mrf.mxu0 }
  0xfa   :  { %v2495_v28 = vpop.f32.mrf.mxu1 }
  0xfb   :  { %v2432_v29 = vpop.f32.mrf.mxu0 }
  0xfc   :  { %v2496_v30 = vpop.f32.mrf.mxu1  ;;  %v2433_v20 = vadd.f32 %v2432_v29, %v2431_v27  ;;  %v2494_v27 = vadd.f32 %v3358_v26, %v3354_v24 }
  0xfd   :  { %v2434_v31 = vpop.f32.mrf.mxu0 }
  0xfe   :  { %v2498_v32 = vpop.f32.mrf.mxu1 }
  0xff   :  { %v2435_v33 = vpop.f32.mrf.mxu0 }
 0x100   :  { %v2499_v34 = vpop.f32.mrf.mxu1 }
 0x101   :  { %v2437_v35 = vpop.f32.mrf.mxu0 }
 0x102   :  { %v3360_v36 = vpop.f32.mrf.mxu1 }
 0x103   :  { %v2438_v37 = vpop.f32.mrf.mxu0 }
 0x104   :  { %v2502_v38 = vpop.f32.mrf.mxu1  ;;  %v2439_v29 = vadd.f32 %v2438_v37, %v2437_v35 }
 0x105   :  { %v3362_v39 = vpop.f32.mrf.mxu0 }
 0x106   :  { %v3364_v40 = vpop.f32.mrf.mxu1 }
 0x107   :  { %v3366_v41 = vpop.f32.mrf.mxu0 }
 0x108   :  { %v3368_v42 = vpop.f32.mrf.mxu1 }
 0x109   :  { %v2443_v43 = vpop.f32.mrf.mxu0 }
 0x10a   :  { %v2507_v44 = vpop.f32.mrf.mxu1 }
 0x10b   :  { %v2444_v45 = vpop.f32.mrf.mxu0 }
 0x10c   :  { %v2508_v46 = vpop.f32.mrf.mxu1 }
 0x10d   :  { %v3370_v47 = vpop.f32.mrf.mxu0 }
 0x10e   :  { %v3372_v48 = vpop.f32.mrf.mxu1 }
 0x10f   :  { %v3374_v49 = vpop.f32.mrf.mxu0 }
 0x110   :  { %v3376_v50 = vpop.f32.mrf.mxu1 }
 0x111   :  { %v2449_v51 = vpop.f32.mrf.mxu0 }
 0x112   :  { %v3378_v52 = vpop.f32.mrf.mxu1 }
 0x113   :  { %v2450_v53 = vpop.f32.mrf.mxu0 }
 0x114   :  { %v3380_v54 = vadd.f32 %v2450_v53, %v2449_v51  ;;  %v3382_v55 = vpop.f32.mrf.mxu1  ;;  %v2497_v51 = vadd.f32 %v2496_v30, %v2495_v28 }
 0x115   :  { %v2452_v56 = vpop.f32.mrf.mxu0 }
 0x116   :  { %v3384_v57 = vpop.f32.mrf.mxu1 }
 0x117   :  { %v2453_v58 = vpop.f32.mrf.mxu0 }
 0x118   :  { %v3386_v59 = vadd.f32 %v2453_v58, %v2452_v56  ;;  %v3388_v60 = vpop.f32.mrf.mxu1  ;;  %v2491_v56 = vadd.f32 %v3350_v22, %v3346_v19  ;;  %v2436_v58 = vadd.f32 %v2435_v33, %v2434_v31  ;;  %v2503_v31 = vadd.f32 %v2502_v38, %v3360_v36  ;;  %v3436_v36 = vld [vmem:[%s3969_s3] ss:$0 sm:$0xff] }
 0x119   :  { %v2455_v61 = vpop.f32.mrf.mxu0  ;;  %v2509_v33 = vadd.f32 %v2508_v46, %v2507_v44  ;;  %v2442_v46 = vadd.f32 %v3366_v41, %v3362_v39 }
 0x11a   :  { %v3390_v62 = vpop.f32.mrf.mxu1  ;;  %v755_v28 = vadd.f32 %v2491_v56, %v3348_v21 }
 0x11b   :  { %v2456_v63 = vpop.f32.mrf.mxu0 }
 0x11c   :  { %v3392_v0 = vadd.f32 %v2456_v63, %v2455_v61  ;;  %v3394_v1 = vpop.f32.mrf.mxu1  ;;  %v2500_v61 = vadd.f32 %v2499_v34, %v2498_v32  ;;  %v2445_v32 = vadd.f32 %v2444_v45, %v2443_v43  ;;  %v771_v45 = vadd.f32 %v2503_v31, %v2439_v29 }
 0x11d   :  { %v2458_v2 = vpop.f32.mrf.mxu0  ;;  %v2521_v41 = vadd.f32 %v3394_v1, %v3390_v62 }
 0x11e   :  { %v3396_v4 = vpop.f32.mrf.mxu1  ;;  %v766_v22 = vadd.f32 %v2500_v61, %v2436_v58  ;;  %v779_v44 = vadd.f32 %v2509_v33, %v2445_v32 }
 0x11f   :  { %v2459_v3 = vpop.f32.mrf.mxu0  ;;  %v795_v32 = vadd.f32 %v2521_v41, %v3392_v0 }
 0x120   :  { %v3398_v5 = vadd.f32 %v2459_v3, %v2458_v2  ;;  %v3400_v8 = vpop.f32.mrf.mxu1 }
 0x121   :  { %v2461_v6 = vpop.f32.mrf.mxu0 }
 0x122   :  { %v3404_v12 = vpop.f32.mrf.mxu1 }
 0x123   :  { %v2462_v7 = vpop.f32.mrf.mxu0 }
 0x124   :  { %v3402_v9 = vadd.f32 %v2462_v7, %v2461_v6  ;;  %v3408_v16 = vpop.f32.mrf.mxu1  ;;  %v763_v6 = vadd.f32 %v2497_v51, %v2433_v20  ;;  %v2448_v20 = vadd.f32 %v3374_v49, %v3370_v47  ;;  %v2512_v51 = vadd.f32 %v3376_v50, %v3372_v48 }
 0x125   :  { %v2464_v10 = vpop.f32.mrf.mxu0 }
 0x126   :  { %v3414_v2 = vpop.f32.mrf.mxu1 }
 0x127   :  { %v2465_v11 = vpop.f32.mrf.mxu0 }
 0x128   :  { %v3406_v13 = vadd.f32 %v2465_v11, %v2464_v10  ;;  %v2430_v10 = vadd.f32 %v3356_v25, %v3352_v23  ;;  %v3424_v34 = vpop.f32.mrf.mxu1  ;;  %v3429_v11 = vld [vmem:[%s3968_s2] ss:$0 sm:$0xff]  ;;  %s3492_s2 = sld [smem:[#allocation2 + $0x2]] }
 0x129   :  { %v2467_v14 = vpop.f32.mrf.mxu0 }
 0x12a   :  { %v758_v26 = vadd.f32 %v2494_v27, %v2430_v10  ;;  %v2515_v27 = vadd.f32 %v3382_v55, %v3378_v52 }
 0x12b   :  { %v2468_v15 = vpop.f32.mrf.mxu0 }
 0x12c   :  { %v3410_v18 = vadd.f32 %v2468_v15, %v2467_v14  ;;  %v2531_v14 = vpop.f32.mrf.mxu1  ;;  %v2506_v15 = vadd.f32 %v3368_v42, %v3364_v40 }
 0x12d   :  { %v2470_v53 = vpop.f32.mrf.mxu0 }
 0x12e   :  { %v2532_v42 = vpop.f32.mrf.mxu1  ;;  %v774_v10 = vadd.f32 %v2506_v15, %v2442_v46 }
 0x12f   :  { %v2471_v63 = vpop.f32.mrf.mxu0 }
 0x130   :  { %v3416_v3 = vadd.f32 %v2471_v63, %v2470_v53  ;;  %v2534_v31 = vpop.f32.mrf.mxu1 }
 0x131   :  { %v2643_v7 = vpop.f32.mrf.mxu0 }
 0x132   :  { %v860_v30 = vadd.f32 %v2643_v7, %v763_v6  ;;  %v782_v6 = vadd.f32 %v2512_v51, %v2448_v20 }
 0x133   :  { %v851_v19 = vpop.f32.mrf.mxu0 }
 0x134   :  { %v852_v23 = vadd.f32 %v851_v19, %v755_v28  ;;  %v923_v35 = vmul.f32 %v3429_v11, %v860_v30 }
 0x135   :  { %v2644_v25 = vpop.f32.mrf.mxu0 }
 0x136   :  { %v921_v24 = vmul.f32 %v3429_v11, %v852_v23  ;;  %v863_v21 = vadd.f32 %v2644_v25, %v766_v22  ;;  %v3455_v39 = vadd.f32 %v3436_v36, %v923_v35  ;;  %v2524_v22 = vadd.f32 %v3400_v8, %v3396_v4 }
 0x137   :  { %v854_v37 = vpop.f32.mrf.mxu0  ;;  %v2533_v35 = vadd.f32 %v2532_v42, %v2531_v14 }
 0x138   :  { %v924_v38 = vmul.f32 %v3429_v11, %v863_v21  ;;  %v855_v43 = vadd.f32 %v854_v37, %v758_v26  ;;  %v3448_v56 = vadd.f32 %v3436_v36, %v921_v24  ;;  %v962_v1 = vmax.f32 %v3455_v39, 0.0 }
 0x139   :  { %v2647_v53 = vpop.f32.mrf.mxu0  ;;  %v787_v21 = vadd.f32 %v2515_v27, %v3380_v54  ;;  %v2518_v26 = vadd.f32 %v3388_v60, %v3384_v57  ;;  %v798_v54 = vadd.f32 %v2524_v22, %v3398_v5  ;;  %v2527_v57 = vadd.f32 %v3408_v16, %v3404_v12 }
 0x13a   :  { %v3451_v58 = vadd.f32 %v3436_v36, %v924_v38  ;;  %v922_v61 = vmul.f32 %v3429_v11, %v855_v43  ;;  %v876_v63 = vadd.f32 %v2647_v53, %v779_v44  ;;  %v960_v28 = vmax.f32 %v3448_v56, 0.0  ;;  %v2535_v43 = vpop.f32.mrf.mxu1 }
 0x13b   :  { %v867_v40 = vpop.f32.mrf.mxu0  ;;  %v790_v12 = vadd.f32 %v2518_v26, %v3386_v59 }
 0x13c   :  { %v3460_v47 = vadd.f32 %v3436_v36, %v922_v61  ;;  %v868_v48 = vadd.f32 %v867_v40, %v771_v45  ;;  %v963_v49 = vmax.f32 %v3451_v58, 0.0  ;;  %v927_v50 = vmul.f32 %v3429_v11, %v876_v63 }
 0x13d   :  { %v2648_v7 = vpop.f32.mrf.mxu0  ;;  %v2536_v63 = vadd.f32 %v2535_v43, %v2534_v31  ;;  %v811_v40 = vadd.f32 %v2533_v35, %v3410_v18 }
 0x13e   :  { %v961_v29 = vmax.f32 %v3460_v47, 0.0  ;;  %v925_v62 = vmul.f32 %v3429_v11, %v868_v48  ;;  %v879_v30 = vadd.f32 %v2648_v7, %v782_v6  ;;  %v3483_v33 = vpack.c.bf16 %v963_v49, %v962_v1 }
 0x13f   :  { %v870_v19 = vpop.f32.mrf.mxu0  ;;  %v3486_v23 = vadd.f32 %v3436_v36, %v927_v50  ;;  %v2530_v6 = vadd.f32 %v3424_v34, %v3414_v2  ;;  %v803_v2 = vadd.f32 %v2527_v57, %v3402_v9  ;;  %v814_v22 = vadd.f32 %v2536_v63, %v3416_v3 }
 0x140   :  { %v3476_v52 = vpack.c.bf16 %v961_v29, %v960_v28  ;;  %v871_v55 = vadd.f32 %v870_v19, %v774_v10  ;;  %v3489_v4 = vadd.f32 %v3436_v36, %v925_v62  ;;  %v928_v8 = vmul.f32 %v3429_v11, %v879_v30 }
 0x141   :  { %v2651_v25 = vpop.f32.mrf.mxu0  ;;  %v3981_v60 = vmax.f32 %v3486_v23, 0.0  ;;  %v3542_v10 = vstv %s3492_s2 }
 0x142   :  { %v926_v24 = vmul.f32 %v3429_v11, %v871_v55  ;;  %v892_v0 = vadd.f32 %v2651_v25, %v795_v32  ;;  %2659 = vmatprep.mubr.msk.bf16.mxu1 %vm998_vm0, %v3476_v52  ;;  %v3501_v37 = vadd.f32 %v3436_v36, %v928_v8  ;;  %v3980_v14 = vmax.f32 %v3489_v4, 0.0 }
 0x143   :  { %v883_v38 = vpop.f32.mrf.mxu0  ;;  %2660 = vmatmul.mubr.msk.bf16.vlgmr.msra.gmra.mxu1 %vm998_vm0, %v3483_v33  ;;  %v1600_v39 = vmul.f32 %v3542_v10, %v963_v49 }
 0x144   :  { %v3506_v44 = vadd.f32 %v3436_v36, %v926_v24  ;;  %v931_v45 = vmul.f32 %v3429_v11, %v892_v0  ;;  %v884_v46 = vadd.f32 %v883_v38, %v787_v21  ;;  %2668 = vmatpush3.bf16.msra.mxu1 %v3343_v17  ;;  %v3979_v15 = vmax.f32 %v3501_v37, 0.0 }
 0x145   :  { %v2652_v20 = vpop.f32.mrf.mxu0  ;;  %v806_v0 = vadd.f32 %v2530_v6, %v3406_v13 }
 0x146   :  { %v3978_v51 = vmax.f32 %v3506_v44, 0.0  ;;  %v954_v53 = vadd.f32 %v3436_v36, %v931_v45  ;;  %v929_v61 = vmul.f32 %v3429_v11, %v884_v46  ;;  %v895_v5 = vadd.f32 %v2652_v20, %v798_v54 }
 0x147   :  { %v3523_v17 = vpack.c.bf16 %v3979_v15, %v3981_v60  ;;  %v886_v16 = vpop.f32.mrf.mxu0 }
 0x148   :  { %v3531_v41 = vpack.c.bf16 %v3978_v51, %v3980_v14  ;;  %v970_v42 = vmax.f32 %v954_v53, 0.0  ;;  %v952_v48 = vadd.f32 %v3436_v36, %v929_v61  ;;  %v932_v50 = vmul.f32 %v3429_v11, %v895_v5 }
 0x149   :  { %v887_v7 = vadd.f32 %v886_v16, %v790_v12  ;;  %2805 = vmatprep.subr.msk.bf16.mxu0 %vm998_vm0, %v3523_v17  ;;  %v2655_v59 = vpop.f32.mrf.mxu0  ;;  %v1009_v18 = vsel %vm998_vm0, %v3523_v17, 0 }
 0x14a   :  { %v968_v27 = vmax.f32 %v952_v48, 0.0  ;;  %v955_v62 = vadd.f32 %v3436_v36, %v932_v50  ;;  %v908_v30 = vadd.f32 %v2655_v59, %v811_v40  ;;  %2678 = vmatpush3.bf16.xpose.msra.mxu0 %v1009_v18  ;;  %2663 = vmatprep.mubr.msk.bf16.mxu1 %vm998_vm0, %v3531_v41  ;;  %v3555_v31 = vmul.f32 %v3542_v10, %v970_v42 }
 0x14b   :  { %v930_v34 = vmul.f32 %v3429_v11, %v887_v7  ;;  %2806 = vmatprep.subr.msk.bf16.mxu0 %vm998_vm0, %v3531_v41  ;;  %v899_v19 = vpop.f32.mrf.mxu0  ;;  %2664 = vmatmul.mubr.msk.bf16.gmra.mxu1 %vm998_vm0, %v3523_v17  ;;  %v1006_v13 = vsel %vm998_vm0, %v3531_v41, 0  ;;  %v1000_v18 = vsel %vm998_vm0, %v3476_v52, 0 }
 0x14c   :  { %v971_v55 = vmax.f32 %v955_v62, 0.0  ;;  %v935_v32 = vmul.f32 %v3429_v11, %v908_v30  ;;  %v900_v8 = vadd.f32 %v899_v19, %v803_v2  ;;  %2669 = vmatprep.mubr.msk.bf16.mxu1 %vm998_vm0, %v3476_v52  ;;  %v3561_v9 = vmul.f32 %v3542_v10, %v968_v27 }
 0x14d   :  { %v953_v25 = vadd.f32 %v3436_v36, %v930_v34  ;;  %v2656_v24 = vpop.f32.mrf.mxu0  ;;  %v3620_v34 = vld [vmem:[%s3971_s5] ss:$0 sm:$0xff] }
 0x14e   :  { %v3565_v21 = vpack.c.bf16 %v971_v55, %v970_v42  ;;  %v958_v3 = vadd.f32 %v3436_v36, %v935_v32  ;;  %v933_v26 = vmul.f32 %v3429_v11, %v900_v8  ;;  %v911_v35 = vadd.f32 %v2656_v24, %v814_v22 }
 0x14f   :  { %v969_v38 = vmax.f32 %v953_v25, 0.0  ;;  %v902_v43 = vpop.f32.mrf.mxu0  ;;  %v3570_v45 = vmul.f32 %v3542_v10, %v971_v55 }
 0x150   :  { %v974_v46 = vmax.f32 %v958_v3, 0.0  ;;  %v956_v54 = vadd.f32 %v3436_v36, %v933_v26  ;;  %v936_v57 = vmul.f32 %v3429_v11, %v911_v35  ;;  %v903_v20 = vadd.f32 %v902_v43, %v806_v0 }
 0x151   :  { %v3574_v53 = vpack.c.bf16 %v969_v38, %v968_v27  ;;  %v3579_v61 = vmul.f32 %v3542_v10, %v969_v38  ;;  %v2920_v27 = vld [vmem:[%s3970_s4] sm:$0xff]  }
 0x152   :  { %v972_v5 = vmax.f32 %v956_v54, 0.0  ;;  %v959_v63 = vadd.f32 %v3436_v36, %v936_v57  ;;  %v934_v12 = vmul.f32 %v3429_v11, %v903_v20  ;;  %2680 = vmatpush3.bf16.xpose.msra.mxu0 %v1006_v13  ;;  %v3584_v16 = vmul.f32 %v3542_v10, %v974_v46 }
 0x153   :  { %2807 = vmatprep.subr.msk.bf16.mxu0 %vm998_vm0, %v3483_v33  ;;  %2670 = vmatmul.mubr.msk.bf16.vlgmr.msra.gmra.mxu1 %vm998_vm0, %v3483_v33 }
 0x154   :  { %v975_v40 = vmax.f32 %v959_v63, 0.0  ;;  %v957_v42 = vadd.f32 %v3436_v36, %v934_v12  ;;  %2673 = vmatprep.mubr.msk.bf16.mxu1 %vm998_vm0, %v3531_v41  ;;  %v3594_v48 = vmul.f32 %v3542_v10, %v972_v5  ;;  %v1003_v36 = vsel %vm998_vm0, %v3483_v33, 0 }
 0x156   :  { %v3596_v11 = vpack.c.bf16 %v975_v40, %v974_v46  ;;  %v973_v50 = vmax.f32 %v957_v42, 0.0  ;;  %v3599_v6 = vmul.f32 %v3542_v10, %v975_v40 }
 0x158   :  { %v3601_v7 = vpack.c.bf16 %v973_v50, %v972_v5  ;;  %v3604_v59 = vmul.f32 %v3542_v10, %v973_v50  ;;  %v3641_v50 = vld [vmem:[%s3973_s7] ss:$0 sm:$0xff] }
 0x15a   :  { %2682 = vmatpush3.bf16.xpose.msra.mxu0 %v1003_v36 }
 0x15b   :  { %2808 = vmatprep.subr.msk.bf16.mxu0 %vm998_vm0, %v3476_v52  ;;  %2674 = vmatmul.mubr.msk.bf16.gmra.mxu1 %vm998_vm0, %v3523_v17 }
 0x162   :  { %2684 = vmatpush3.bf16.xpose.msra.mxu0 %v1000_v18  ;;  %v1650_v18 = vsel %vm998_vm0, %v3596_v11, 0 }
 0x163   :  { %2731 = vmatprep.subr.bf16.mxu0 %v2920_v27 }
 0x203   :  { %v2661_v62 = vpop.f32.mrf.mxu1 }
 0x204   :  { %v1054_v8 = vadd.f32 %v2661_v62, %v3620_v34 }
 0x205   :  { %v1045_v30 = vpop.f32.mrf.mxu1 }
 0x206   :  { %v1046_v55 = vadd.f32 %v3620_v34, %v1045_v30 }
 0x207   :  { %v2662_v2 = vpop.f32.mrf.mxu1 }
 0x208   :  { %v1057_v19 = vadd.f32 %v2662_v2, %v3620_v34 }
 0x209   :  { %v1048_v22 = vpop.f32.mrf.mxu1 }
 0x20a   :  { %v1049_v32 = vadd.f32 %v3620_v34, %v1048_v22  ;;  %v1157_v0 = vpack.c.bf16 %v1057_v19, %v1054_v8 }
 0x20b   :  { %v2665_v25 = vpop.f32.mrf.mxu1 }
 0x20c   :  { %v1156_v24 = vpack.c.bf16 %v1049_v32, %v1046_v55  ;;  %v1070_v54 = vadd.f32 %v2665_v25, %v3620_v34  ;;  %v1647_v25 = vsel %vm998_vm0, %v3601_v7, 0 }
 0x20d   :  { %v1061_v3 = vpop.f32.mrf.mxu1 }
 0x20e   :  { %2685 = vmatprep.mubr.msk.bf16.mxu0 %vm998_vm0, %v1156_v24  ;;  %v1062_v43 = vadd.f32 %v3620_v34, %v1061_v3 }
 0x20f   :  { %v2666_v26 = vpop.f32.mrf.mxu1  ;;  %2686 = vmatmul.mubr.msk.bf16.vlgmr.msra.gmra.mxu0 %vm998_vm0, %v1157_v0 }
 0x210   :  { %2732 = vmatpush3.bf16.msra.mxu0 %v2920_v27  ;;  %v1073_v35 = vadd.f32 %v2666_v26, %v3620_v34 }
 0x211   :  { %2810 = vmatprep.subr.msk.bf16.mxu0 %vm998_vm0, %v3596_v11  ;;  %v1064_v38 = vpop.f32.mrf.mxu1 }
 0x212   :  { %v1065_v46 = vadd.f32 %v3620_v34, %v1064_v38  ;;  %v1159_v13 = vpack.c.bf16 %v1073_v35, %v1070_v54  ;;  %v1644_v35 = vsel %vm998_vm0, %v3565_v21, 0  ;;  %v1641_v38 = vsel %vm998_vm0, %v3574_v53, 0 }
 0x213   :  { %v2671_v57 = vpop.f32.mrf.mxu1 }
 0x214   :  { %v1158_v20 = vpack.c.bf16 %v1065_v46, %v1062_v43  ;;  %v1134_v8 = vadd.f32 %v2671_v57, %v3641_v50 }
 0x215   :  { %v1125_v5 = vpop.f32.mrf.mxu1 }
 0x216   :  { %2689 = vmatprep.mubr.msk.bf16.mxu0 %vm998_vm0, %v1158_v20  ;;  %v1126_v3 = vadd.f32 %v3641_v50, %v1125_v5 }
 0x217   :  { %v2672_v63 = vpop.f32.mrf.mxu1  ;;  %2690 = vmatmul.mubr.msk.bf16.gmra.mxu0 %vm998_vm0, %v1159_v13 }
 0x218   :  { %2733 = vmatprep.mubr.msk.bf16.mxu0 %vm998_vm0, %v3574_v53  ;;  %v1137_v55 = vadd.f32 %v2672_v63, %v3641_v50 }
 0x219   :  { %v1128_v12 = vpop.f32.mrf.mxu1 }
 0x21a   :  { %v1331_v24 = vpack.c.bf16 %v1137_v55, %v1134_v8  ;;  %v1129_v0 = vadd.f32 %v3641_v50, %v1128_v12 }
 0x21b   :  { %v2675_v40 = vpop.f32.mrf.mxu1 }
 0x21c   :  { %v1150_v27 = vadd.f32 %v2675_v40, %v3641_v50  ;;  %v1330_v26 = vpack.c.bf16 %v1129_v0, %v1126_v3 }
 0x21d   :  { %v1141_v42 = vpop.f32.mrf.mxu1 }
 0x21e   :  { %v1142_v2 = vadd.f32 %v3641_v50, %v1141_v42 }
 0x21f   :  { %v2676_v36 = vpop.f32.mrf.mxu1  ;;  %2734 = vmatmul.mubr.msk.bf16.vlgmr.msra.gmra.mxu0 %vm998_vm0, %v3565_v21 }
 0x220   :  { %v1153_v62 = vadd.f32 %v2676_v36, %v3641_v50  ;;  %2752 = vmatpush3.bf16.xpose.msra.mxu0 %v1650_v18  ;;  %2737 = vmatprep.mubr.msk.bf16.mxu0 %vm998_vm0, %v3601_v7 }
 0x221   :  { %2811 = vmatprep.subr.msk.bf16.mxu0 %vm998_vm0, %v3601_v7  ;;  %v1144_v30 = vpop.f32.mrf.mxu1 }
 0x222   :  { %v1333_v19 = vpack.c.bf16 %v1153_v62, %v1150_v27  ;;  %v1145_v22 = vadd.f32 %v3641_v50, %v1144_v30 }
 0x224   :  { %v1332_v32 = vpack.c.bf16 %v1145_v22, %v1142_v2  ;;  %2693 = vmatprep.subr.bf16.mxu1 %v1333_v19 }
 0x225   :  { %2694 = vmatpush3.bf16.msra.mxu1 %v1333_v19 }
 0x226   :  { %2695 = vmatprep.subr.bf16.mxu1 %v1332_v32 }
 0x227   :  { %2738 = vmatmul.mubr.msk.bf16.gmra.mxu0 %vm998_vm0, %v3596_v11 }
 0x228   :  { %2754 = vmatpush3.bf16.xpose.msra.mxu0 %v1647_v25 }
 0x229   :  { %2812 = vmatprep.subr.msk.bf16.mxu0 %vm998_vm0, %v3565_v21  ;;  %2696 = vmatpush3.bf16.msra.mxu1 %v1332_v32 }
 0x22a   :  { %2697 = vmatprep.subr.bf16.mxu1 %v1331_v24 }
 0x22d   :  { %2698 = vmatpush3.bf16.msra.mxu1 %v1331_v24 }
 0x22e   :  { %2699 = vmatprep.subr.bf16.mxu1 %v1330_v26 }
 0x230   :  { %2756 = vmatpush3.bf16.xpose.msra.mxu0 %v1644_v35 }
 0x231   :  { %2813 = vmatprep.subr.msk.bf16.mxu0 %vm998_vm0, %v3574_v53  ;;  %2700 = vmatpush3.bf16.msra.mxu1 %v1330_v26 }
 0x238   :  { %2758 = vmatpush3.bf16.xpose.msra.mxu0 %v1641_v38 }
 0x2cf   :  { %v2687_v43 = vpop.f32.mrf.mxu0 }
 0x2d0   :  { %v1244_v46 = vsel %vm1237_vm1, %v2687_v43, -inf }
 0x2d1   :  { %1245 = vmax.xlane.f32.xlu1 %v1244_v46  ;;  %v1206_v54 = vpop.f32.mrf.mxu0 }
 0x2d2   :  { %v1238_v57 = vsel %vm1237_vm1, %v1206_v54, -inf }
 0x2d3   :  { %1239 = vmax.xlane.f32.xlu0 %v1238_v57  ;;  %v2688_v20 = vpop.f32.mrf.mxu0 }
 0x2d4   :  { %v1247_v13 = vsel %vm1237_vm1, %v2688_v20, -inf }
 0x2d5   :  { %1248 = vmax.xlane.f32.xlu1 %v1247_v13  ;;  %v1209_v5 = vpop.f32.mrf.mxu0 }
 0x2d6   :  { %v1241_v63 = vsel %vm1237_vm1, %v1209_v5, -inf }
 0x2d7   :  { %1242 = vmax.xlane.f32.xlu0 %v1241_v63  ;;  %v2691_v12 = vpop.f32.mrf.mxu0 }
 0x2d8   :  { %v1256_v27 = vsel %vm1237_vm1, %v2691_v12, -inf }
 0x2d9   :  { %v1222_v40 = vpop.f32.mrf.mxu0 }
 0x2da   :  { %v1250_v42 = vsel %vm1237_vm1, %v1222_v40, -inf }
 0x2db   :  { %1251 = vmax.xlane.f32.xlu0 %v1250_v42  ;;  %v3676_v36 = vpop.f32.mrf.mxu0 }
 0x2dc   :  { %v1259_v19 = vsel %vm1237_vm1, %v3676_v36, -inf }
 0x2dd   :  { %v1225_v18 = vpop.f32.mrf.mxu0 }
 0x2de   :  { %v1253_v62 = vsel %vm1237_vm1, %v1225_v18, -inf }
 0x2df   :  { %1257 = vmax.xlane.f32.xlu0 %v1256_v27  ;;  %v2735_v30 = vpop.f32.mrf.mxu0  ;;  %1254 = vmax.xlane.f32.xlu1 %v1253_v62 }
 0x2e0   :  { %v1695_v24 = vadd.f32 %v2735_v30, %v3620_v34 }
 0x2e1   :  { %v1686_v2 = vpop.f32.mrf.mxu0 }
 0x2e2   :  { %v1687_v8 = vadd.f32 %v3620_v34, %v1686_v2 }
 0x2e3   :  { %v2736_v22 = vpop.f32.mrf.mxu0  ;;  %1260 = vmax.xlane.f32.xlu1 %v1259_v19 }
 0x2e4   :  { %v1698_v55 = vadd.f32 %v2736_v22, %v3620_v34 }
 0x2e5   :  { %v1689_v32 = vpop.f32.mrf.mxu0 }
 0x2e6   :  { %v1690_v25 = vadd.f32 %v3620_v34, %v1689_v32  ;;  %v1798_v26 = vpack.c.bf16 %v1698_v55, %v1695_v24 }
 0x2e7   :  { %v2739_v0 = vpop.f32.mrf.mxu0 }
 0x2e8   :  { %v1797_v3 = vpack.c.bf16 %v1690_v25, %v1687_v8  ;;  %v1711_v42 = vadd.f32 %v2739_v0, %v3620_v34 }
 0x2e9   :  { %v1702_v35 = vpop.f32.mrf.mxu0 }
 0x2ea   :  { %2759 = vmatprep.mubr.msk.bf16.mxu0 %vm998_vm0, %v1797_v3  ;;  %v1703_v13 = vadd.f32 %v3620_v34, %v1702_v35 }
 0x2eb   :  { %v2740_v38 = vpop.f32.mrf.mxu0  ;;  %2760 = vmatmul.mubr.msk.bf16.vlgmr.msra.gmra.mxu0 %vm998_vm0, %v1798_v26 }
 0x2ec   :  { %v1714_v46 = vadd.f32 %v2740_v38, %v3620_v34 }
 0x2ed   :  { %v1705_v57 = vpop.f32.mrf.mxu0 }
 0x2ee   :  { %v1706_v63 = vadd.f32 %v3620_v34, %v1705_v57  ;;  %v1800_v62 = vpack.c.bf16 %v1714_v46, %v1711_v42 }
 0x2f0   :  { %v1799_v27 = vpack.c.bf16 %v1706_v63, %v1703_v13 }
 0x2f2   :  { %2763 = vmatprep.mubr.msk.bf16.mxu0 %vm998_vm0, %v1799_v27 }
 0x2f3   :  { %2764 = vmatmul.mubr.msk.bf16.gmra.mxu0 %vm998_vm0, %v1800_v62 }
 0x2f4   :  { %2797 = vmatprep.mubr.msk.bf16.mxu0 %vm998_vm0, %v3574_v53 }
 0x35a   :  { %v1246_v30 = vpop.xlane.xlu1 %1245 }
 0x35b   :  { %v1264_v2 = vsub.f32 %v2687_v43, %v1246_v30 }
 0x35c   :  { %v1240_v19 = vpop.xlane.xlu0 %1239 }
 0x35d   :  { %v1262_v22 = vsub.f32 %v1206_v54, %v1240_v19  ;;  %v1274_v32 = vmul.f32 1.442695, %v1264_v2 }
 0x35e   :  { %v1249_v55 = vpop.xlane.xlu1 %1248 }
 0x35f   :  { %v1270_v8 = vmul.f32 1.442695, %v1262_v22  ;;  %v1265_v25 = vsub.f32 %v2688_v20, %v1249_v55 }
 0x360   :  { %v1243_v24 = vpop.xlane.xlu0 %1242 }
 0x361   :  { %2922 = vpow2.f32 %v1270_v8  ;;  %v1263_v34 = vsub.f32 %v1209_v5, %v1243_v24  ;;  %v1276_v0 = vmul.f32 1.442695, %v1265_v25 }
 0x362   :  { %2924 = vpow2.f32 %v1274_v32 }
 0x363   :  { %v1272_v3 = vmul.f32 1.442695, %v1263_v34 }
 0x364   :  { %v1252_v26 = vpop.xlane.xlu0 %1251 }
 0x365   :  { %2926 = vpow2.f32 %v1272_v3  ;;  %v1266_v35 = vsub.f32 %v1222_v40, %v1252_v26 }
 0x366   :  { %2928 = vpow2.f32 %v1276_v0  ;;  %v3976_v0 = vmov 0.0  }
 0x367   :  { %v1278_v38 = vmul.f32 1.442695, %v1266_v35  ;;  %2709 = vmatprep.subr.bf16.mxu1 %v3976_v0 }
 0x368   :  { %v1258_v46 = vpop.xlane.xlu0 %1257  ;;  %v1255_v57 = vpop.xlane.xlu1 %1254 }
 0x369   :  { %2930 = vpow2.f32 %v1278_v38  ;;  %v1268_v43 = vsub.f32 %v2691_v12, %v1258_v46  ;;  %v1267_v54 = vsub.f32 %v1225_v18, %v1255_v57 }
 0x36b   :  { %v1282_v13 = vmul.f32 1.442695, %v1268_v43  ;;  %v1280_v63 = vmul.f32 1.442695, %v1267_v54 }
 0x36c   :  { %v1261_v42 = vpop.xlane.xlu1 %1260 }
 0x36d   :  { %2932 = vpow2.f32 %v1282_v13  ;;  %v1269_v20 = vsub.f32 %v3676_v36, %v1261_v42 }
 0x36e   :  { %v2923_v5 = vpop.eup %2922  ;;  %2934 = vpow2.f32 %v1280_v63 }
 0x36f   :  { %v1284_v27 = vmul.f32 1.442695, %v1269_v20  ;;  %v1286_v62 = vsel %vm1237_vm1, %v2923_v5, 0.0  ;;  %v2925_v30 = vpop.eup %2924 }
 0x370   :  { %1287 = vadd.xlane.f32.xlu0 %v1286_v62  ;;  %v1292_v2 = vsel %vm1237_vm1, %v2925_v30, 0.0 }
 0x371   :  { %2936 = vpow2.f32 %v1284_v27 }
 0x372   :  { %v2927_v40 = vpop.eup %2926 }
 0x373   :  { %v1289_v12 = vsel %vm1237_vm1, %v2927_v40, 0.0  ;;  %v2929_v18 = vpop.eup %2928 }
 0x374   :  { %1293 = vadd.xlane.f32.xlu0 %v1292_v2  ;;  %1290 = vadd.xlane.f32.xlu1 %v1289_v12  ;;  %v1295_v36 = vsel %vm1237_vm1, %v2929_v18, 0.0 }
 0x376   :  { %v2931_v19 = vpop.eup %2930 }
 0x377   :  { %v1298_v22 = vsel %vm1237_vm1, %v2931_v19, 0.0 }
 0x378   :  { %1299 = vadd.xlane.f32.xlu0 %v1298_v22  ;;  %1296 = vadd.xlane.f32.xlu1 %v1295_v36 }
 0x37a   :  { %v2933_v55 = vpop.eup %2932 }
 0x37b   :  { %v2935_v32 = vpop.eup %2934  ;;  %v1304_v8 = vsel %vm1237_vm1, %v2933_v55, 0.0 }
 0x37c   :  { %1305 = vadd.xlane.f32.xlu0 %v1304_v8  ;;  %v1301_v25 = vsel %vm1237_vm1, %v2935_v32, 0.0 }
 0x37d   :  { %1302 = vadd.xlane.f32.xlu1 %v1301_v25 }
 0x37e   :  { %v2937_v24 = vpop.eup %2936 }
 0x37f   :  { %v1307_v34 = vsel %vm1237_vm1, %v2937_v24, 0.0 }
 0x381   :  { %1308 = vadd.xlane.f32.xlu1 %v1307_v34 }
 0x3a9   :  { %1411 = vxpose.xlu0.c.b16.start [1/4] (short) (narrow) %v3476_v52, 16 }
 0x3ad   :  { %1412 = vxpose.xlu0.c.b16.cont [2/4] (short) (narrow) %v3483_v33, 16 }
 0x3b1   :  { %1413 = vxpose.xlu0.c.b16.cont [3/4] (short) (narrow) %v3531_v41, 16 }
 0x3b5   :  { %1414 = vxpose.xlu0.c.b16.end [4/4] (short) (narrow) %v3523_v17, 16 }
 0x3f9   :  { %v1288_v3 = vpop.xlane.xlu0 %1287 }
 0x3fa   :  { %2938 = vrcp.f32 %v1288_v3 }
 0x3fd   :  { %v1294_v26 = vpop.xlane.xlu0 %1293  ;;  %v1291_v35 = vpop.xlane.xlu1 %1290 }
 0x3fe   :  { %2940 = vrcp.f32 %v1291_v35 }
 0x3ff   :  { %2942 = vrcp.f32 %v1294_v26 }
 0x401   :  { %v1300_v38 = vpop.xlane.xlu0 %1299  ;;  %v1297_v46 = vpop.xlane.xlu1 %1296 }
 0x402   :  { %2944 = vrcp.f32 %v1297_v46 }
 0x403   :  { %2946 = vrcp.f32 %v1300_v38 }
 0x405   :  { %v1306_v57 = vpop.xlane.xlu0 %1305 }
 0x406   :  { %v1303_v43 = vpop.xlane.xlu1 %1302 }
 0x407   :  { %2948 = vrcp.f32 %v1303_v43  ;;  %v2939_v54 = vpop.eup %2938 }
 0x408   :  { %2950 = vrcp.f32 %v1306_v57  ;;  %v1318_v42 = vmul.f32 %v2939_v54, %v2923_v5 }
 0x40a   :  { %v1309_v13 = vpop.xlane.xlu1 %1308 }
 0x40b   :  { %2952 = vrcp.f32 %v1309_v13  ;;  %v2941_v63 = vpop.eup %2940 }
 0x40c   :  { %v1319_v20 = vmul.f32 %v2941_v63, %v2927_v40  ;;  %v2943_v27 = vpop.eup %2942 }
 0x40d   :  { %v1320_v12 = vmul.f32 %v2943_v27, %v2925_v30 }
 0x40e   :  { %v1326_v62 = vpack.c.bf16 %v1319_v20, %v1318_v42 }
 0x40f   :  { %v2945_v2 = vpop.eup %2944 }
 0x410   :  { %v1321_v22 = vmul.f32 %v2945_v2, %v2929_v18  ;;  %2701 = vmatprep.mubr.msk.bf16.mxu1 %vm1237_vm1, %v1326_v62  ;;  %v2947_v36 = vpop.eup %2946 }
 0x411   :  { %v1322_v34 = vmul.f32 %v2947_v36, %v2931_v19  ;;  %v1419_v19 = vpop.trf.xlu0 }
 0x412   :  { %v1327_v8 = vpack.c.bf16 %v1321_v22, %v1320_v12 }
 0x414   :  { %v2949_v25 = vpop.eup %2948  ;;  %2702 = vmatmul.mubr.msk.bf16.vlgmr.msra.gmra.mxu1 %vm1237_vm1, %v1327_v8 }
 0x415   :  { %v1323_v3 = vmul.f32 %v2949_v25, %v2935_v32  ;;  %v2951_v26 = vpop.eup %2950  ;;  %2710 = vmatpush3.bf16.msra.mxu1 %v3523_v17 }
 0x416   :  { %2711 = vmatprep.subr.bf16.mxu1 %v3976_v0  ;;  %v1324_v30 = vmul.f32 %v2951_v26, %v2933_v55 }
 0x417   :  { %v1328_v5 = vpack.c.bf16 %v1323_v3, %v1322_v34 }
 0x418   :  { %v2953_v40 = vpop.eup %2952 }
 0x419   :  { %2705 = vmatprep.mubr.msk.bf16.mxu1 %vm1237_vm1, %v1328_v5  ;;  %v1325_v18 = vmul.f32 %v2953_v40, %v2937_v24  ;;  %2712 = vmatpush3.bf16.msra.mxu1 %v3531_v41 }
 0x41a   :  { %2713 = vmatprep.subr.bf16.mxu1 %v3976_v0 }
 0x41b   :  { %v1329_v35 = vpack.c.bf16 %v1325_v18, %v1324_v30  ;;  %v2761_v30 = vpop.f32.mrf.mxu0 }
 0x41d   :  { %2706 = vmatmul.mubr.msk.bf16.gmra.mxu1 %vm1237_vm1, %v1329_v35 }
 0x41e   :  { %2714 = vmatpush3.bf16.msra.mxu1 %v3483_v33  ;;  %2717 = vmatprep.mubr.msk.bf16.mxu1 %vm3040_vm2, %v3976_v0 }
 0x41f   :  { %2715 = vmatprep.subr.bf16.mxu1 %v3976_v0 }
 0x422   :  { %2716 = vmatpush3.bf16.msra.mxu1 %v3476_v52 }
 0x425   :  { %2718 = vmatmul.mubr.msk.bf16.vlgmr.msra.gmra.mxu1 %vm1237_vm1, %v1419_v19  ;;  %v1847_v19 = vpop.f32.mrf.mxu0 }
 0x426   :  { %2723 = vmatprep.mubr.msk.bf16.mxu1 %vm998_vm0, %v3476_v52 }
 0x4d4   :  { %v3726_v55 = vpop.f32.mrf.mxu1 }
 0x4d6   :  { %v3728_v32 = vpop.f32.mrf.mxu1 }
 0x4d8   :  { %v3730_v24 = vpop.f32.mrf.mxu1 }
 0x4da   :  { %v3732_v38 = vpop.f32.mrf.mxu1 }
 0x4dd   :  { %v3734_v46 = vpop.f32.mrf.mxu1 }
 0x4df   :  { %v3736_v57 = vpop.f32.mrf.mxu1 }
 0x4e1   :  { %v3738_v43 = vpop.f32.mrf.mxu1 }
 0x4e3   :  { %v3740_v54 = vpop.f32.mrf.mxu1 }
 0x4e5   :  { %v1464_v13 = vpop.f32.mrf.mxu1 }
 0x4e6   :  { %v1471_v63 = vsel %vm998_vm0, %v1464_v13, -inf }
 0x4e7   :  { %1472 = vmax.xlane.f32.xlu1 %v1471_v63  ;;  %v2719_v52 = vpop.f32.mrf.mxu1 }
 0x4e8   :  { %v2762_v52 = vpop.f32.mrf.mxu0 }
 0x4e9   :  { %v1467_v42 = vpop.f32.mrf.mxu1 }
 0x4ea   :  { %v1474_v20 = vsel %vm998_vm0, %v1467_v42, -inf }
 0x4eb   :  { %1475 = vmax.xlane.f32.xlu1 %v1474_v20  ;;  %v2720_v27 = vpop.f32.mrf.mxu1  ;;  %v1850_v20 = vpop.f32.mrf.mxu0 }
 0x4ec   :  { %v1881_v27 = vsel %vm1237_vm1, %v1850_v20, -inf }
 0x570   :  { %v1473_v62 = vpop.xlane.xlu1 %1472 }
 0x571   :  { %v1477_v2 = vsub.f32 %v1473_v62, %v1464_v13  ;;  %v3750_v62 = vpop.f32.mrf.mxu0 }
 0x573   :  { %v1479_v12 = vsel %vm998_vm0, %v1477_v2, -inf }
 0x574   :  { %1480 = vmax.xlane.f32.xlu1 %v1479_v12  ;;  %v1476_v22 = vpop.xlane.xlu1 %1475  ;;  %v1863_v12 = vpop.f32.mrf.mxu0 }
 0x575   :  { %v1478_v36 = vsub.f32 %v1476_v22, %v1467_v42  ;;  %v1878_v42 = vsel %vm1237_vm1, %v1847_v19, -inf  ;;  %v1887_v22 = vsel %vm1237_vm1, %v2762_v52, -inf }
 0x577   :  { %v1482_v8 = vsel %vm998_vm0, %v1478_v36, -inf }
 0x578   :  { %1483 = vmax.xlane.f32.xlu1 %v1482_v8  ;;  %v1890_v8 = vsel %vm1237_vm1, %v1863_v12, -inf }
 0x5fd   :  { %v1481_v25 = vpop.xlane.xlu1 %1480 }
 0x5fe   :  { %v1485_v34 = vsub.f32 %v1477_v2, %v1481_v25  ;;  %v1884_v2 = vsel %vm1237_vm1, %v2761_v30, -inf }
 0x600   :  { %v1487_v3 = vmul.f32 1.442695, %v1485_v34 }
 0x601   :  { %v1484_v26 = vpop.xlane.xlu1 %1483 }
 0x602   :  { %2954 = vpow2.f32 %v1487_v3  ;;  %v1486_v5 = vsub.f32 %v1478_v36, %v1484_v26  ;;  %v3754_v36 = vpop.f32.mrf.mxu0  ;;  %v1896_v3 = vsel %vm1237_vm1, %v3750_v62, -inf }
 0x603   :  { %v1899_v26 = vsel %vm1237_vm1, %v3754_v36, -inf }
 0x604   :  { %v1489_v40 = vmul.f32 1.442695, %v1486_v5  ;;  %v1866_v25 = vpop.f32.mrf.mxu0 }
 0x605   :  { %v1893_v34 = vsel %vm1237_vm1, %v1866_v25, -inf }
 0x606   :  { %2956 = vpow2.f32 %v1489_v40 }
 0x60f   :  { %v2955_v18 = vpop.eup %2954 }
 0x610   :  { %v1491_v35 = vsel %vm998_vm0, %v2955_v18, 0.0 }
 0x611   :  { %1492 = vadd.xlane.f32.xlu1 %v1491_v35 }
 0x613   :  { %v2957_v13 = vpop.eup %2956 }
 0x614   :  { %v1494_v63 = vsel %vm998_vm0, %v2957_v13, 0.0 }
 0x615   :  { %1495 = vadd.xlane.f32.xlu1 %v1494_v63 }
 0x619   :  { %1879 = vmax.xlane.f32.xlu1 %v1878_v42 }
 0x61d   :  { %1882 = vmax.xlane.f32.xlu1 %v1881_v27 }
 0x621   :  { %1885 = vmax.xlane.f32.xlu1 %v1884_v2 }
 0x625   :  { %1888 = vmax.xlane.f32.xlu1 %v1887_v22 }
 0x629   :  { %1891 = vmax.xlane.f32.xlu1 %v1890_v8 }
 0x62d   :  { %1894 = vmax.xlane.f32.xlu1 %v1893_v34 }
 0x631   :  { %1897 = vmax.xlane.f32.xlu1 %v1896_v3 }
 0x635   :  { %1900 = vmax.xlane.f32.xlu1 %v1899_v26 }
 0x69a   :  { %v1493_v5 = vpop.xlane.xlu1 %1492 }
 0x69b   :  { %2958 = vrcp.f32 %v1493_v5 }
 0x69e   :  { %v1496_v40 = vpop.xlane.xlu1 %1495 }
 0x69f   :  { %2960 = vrcp.f32 %v1496_v40 }
 0x6a2   :  { %v1880_v35 = vpop.xlane.xlu1 %1879 }
 0x6a3   :  { %v1902_v63 = vsub.f32 %v1847_v19, %v1880_v35  ;;  %v2921_v19 = vld [vmem:[%s3972_s6] sm:$0xff]   ;;  %s976_s6 = sld [smem:[#allocation2]] }
 0x6a5   :  { %v1910_v42 = vmul.f32 1.442695, %v1902_v63 }
 0x6a6   :  { %v1883_v27 = vpop.xlane.xlu1 %1882 }
 0x6a7   :  { %2962 = vpow2.f32 %v1910_v42  ;;  %v1903_v2 = vsub.f32 %v1850_v20, %v1883_v27 }
 0x6a8   :  { %v2959_v8 = vpop.eup %2958 }
 0x6a9   :  { %v1912_v22 = vmul.f32 1.442695, %v1903_v2  ;;  %v1499_v15 = vmul.f32 %v2959_v8, %v2955_v18 }
 0x6aa   :  { %v1886_v34 = vpop.xlane.xlu1 %1885 }
 0x6ab   :  { %2964 = vpow2.f32 %v1912_v22  ;;  %v1904_v0 = vsub.f32 %v2761_v30, %v1886_v34 }
 0x6ac   :  { %v2961_v3 = vpop.eup %2960 }
 0x6ad   :  { %v1914_v51 = vmul.f32 1.442695, %v1904_v0  ;;  %v1500_v14 = vmul.f32 %v2961_v3, %v2957_v13 }
 0x6ae   :  { %v1889_v26 = vpop.xlane.xlu1 %1888 }
 0x6af   :  { %2966 = vpow2.f32 %v1914_v51  ;;  %v1905_v5 = vsub.f32 %v2762_v52, %v1889_v26  ;;  %v1501_v60 = vpack.c.bf16 %v1500_v14, %v1499_v15 }
 0x6b1   :  { %v1916_v40 = vmul.f32 1.442695, %v1905_v5  ;;  %2809 = vmatprep.subr.msk.bf16.mxu1 %vm998_vm0, %v1501_v60  ;;  %v1503_v20 = vsel %vm998_vm0, %v1501_v60, 0 }
 0x6b2   :  { %2722 = vmatpush3.bf16.xpose.msra.mxu1 %v1503_v20  ;;  %v1892_v35 = vpop.xlane.xlu1 %1891 }
 0x6b3   :  { %2968 = vpow2.f32 %v1916_v40  ;;  %v1906_v30 = vsub.f32 %v1863_v12, %v1892_v35  ;;  %2741 = vmatprep.subr.bf16.mxu1 %v2921_v19 }
 0x6b4   :  { %v2963_v0 = vpop.eup %2962 }
 0x6b5   :  { %v1918_v18 = vmul.f32 1.442695, %v1906_v30  ;;  %v1926_v51 = vsel %vm1237_vm1, %v2963_v0, 0.0 }
 0x6b6   :  { %1927 = vadd.xlane.f32.xlu1 %v1926_v51  ;;  %v1895_v14 = vpop.xlane.xlu1 %1894 }
 0x6b7   :  { %2970 = vpow2.f32 %v1918_v18  ;;  %v1907_v15 = vsub.f32 %v1866_v25, %v1895_v14 }
 0x6b8   :  { %v2965_v13 = vpop.eup %2964 }
 0x6b9   :  { %v1920_v52 = vmul.f32 1.442695, %v1907_v15  ;;  %2724 = vmatmul.mubr.msk.bf16.vlgmr.msra.gmra.mxu1 %vm998_vm0, %v3483_v33  ;;  %v1929_v60 = vsel %vm1237_vm1, %v2965_v13, 0.0  ;;  %v3814_v15 = vstv %s976_s6 }
 0x6ba   :  { %2727 = vmatprep.mubr.msk.bf16.mxu1 %vm998_vm0, %v3531_v41  ;;  %1930 = vadd.xlane.f32.xlu0 %v1929_v60  ;;  %v1898_v12 = vpop.xlane.xlu1 %1897  ;;  %v1577_v58 = vmul.f32 %v3734_v46, %v3814_v15  ;;  %v1575_v47 = vmul.f32 %v3814_v15, %v3736_v57 }
 0x6bb   :  { %2972 = vpow2.f32 %v1920_v52  ;;  %v1908_v63 = vsub.f32 %v3750_v62, %v1898_v12  ;;  %2742 = vmatpush3.bf16.msra.mxu1 %v2921_v19  ;;  %v3816_v52 = vstv %s2357_s27  ;;  %v1573_v12 = vmul.f32 %v3726_v55, %v3814_v15 }
 0x6bc   :  { %v3774_v42 = vpop.eup %2966  ;;  %v1574_v55 = vmul.f32 %v3730_v24, %v3814_v15  ;;  %v1598_v24 = vmul.f32 %v3542_v10, %v961_v29 }
 0x6bd   :  { %v1922_v27 = vmul.f32 1.442695, %v1908_v63  ;;  %v1932_v25 = vsel %vm1237_vm1, %v3774_v42, 0.0 }
 0x6be   :  { %1933 = vadd.xlane.f32.xlu1 %v1932_v25  ;;  %v1901_v2 = vpop.xlane.xlu1 %1900  ;;  %v1599_v25 = vmul.f32 %v3542_v10, %v962_v1  ;;  %v1572_v1 = vmul.f32 %v3814_v15, %v3732_v38 }
 0x6bf   :  { %2974 = vpow2.f32 %v1922_v27  ;;  %v1909_v33 = vsub.f32 %v3754_v36, %v1901_v2 }
 0x6c0   :  { %v3779_v22 = vpop.eup %2968 }
 0x6c1   :  { %v1924_v41 = vmul.f32 1.442695, %v1909_v33  ;;  %2728 = vmatmul.mubr.msk.bf16.gmra.mxu1 %vm998_vm0, %v3523_v17  ;;  %v1935_v62 = vsel %vm1237_vm1, %v3779_v22, 0.0  ;;  %v1597_v33 = vmul.f32 %v3542_v10, %v960_v28 }
 0x6c2   :  { %2743 = vmatprep.mubr.msk.bf16.mxu1 %vm998_vm0, %v3574_v53  ;;  %1936 = vadd.xlane.f32.xlu1 %v1935_v62 }
 0x6c3   :  { %2976 = vpow2.f32 %v1924_v41 }
 0x6c4   :  { %v3787_v8 = vpop.eup %2970 }
 0x6c5   :  { %v1938_v34 = vsel %vm1237_vm1, %v3787_v8, 0.0 }
 0x6c6   :  { %1939 = vadd.xlane.f32.xlu1 %v1938_v34 }
 0x6c8   :  { %v3791_v36 = vpop.eup %2972 }
 0x6c9   :  { %2744 = vmatmul.mubr.msk.bf16.vlgmr.msra.gmra.mxu1 %vm998_vm0, %v3565_v21  ;;  %v1941_v17 = vsel %vm1237_vm1, %v3791_v36, 0.0 }
 0x6ca   :  { %2747 = vmatprep.mubr.msk.bf16.mxu1 %vm998_vm0, %v3601_v7  ;;  %1942 = vadd.xlane.f32.xlu0 %v1941_v17 }
 0x6cc   :  { %v3799_v3 = vpop.eup %2974 }
 0x6cd   :  { %v1944_v26 = vsel %vm1237_vm1, %v3799_v3, 0.0 }
 0x6ce   :  { %1945 = vadd.xlane.f32.xlu1 %v1944_v26 }
 0x6d0   :  { %v3803_v5 = vpop.eup %2976 }
 0x6d1   :  { %2748 = vmatmul.mubr.msk.bf16.gmra.mxu1 %vm998_vm0, %v3596_v11  ;;  %v1947_v19 = vsel %vm1237_vm1, %v3803_v5, 0.0 }
 0x6d2   :  { %1948 = vadd.xlane.f32.xlu0 %v1947_v19 }
 0x6fb   :  { %2051 = vxpose.xlu1.c.b16.start [1/4] (short) (narrow) %v3574_v53, 16 }
 0x6ff   :  { %2052 = vxpose.xlu1.c.b16.cont [2/4] (short) (narrow) %v3565_v21, 16 }
 0x703   :  { %2053 = vxpose.xlu1.c.b16.cont [3/4] (short) (narrow) %v3601_v7, 16 }
 0x707   :  { %2054 = vxpose.xlu1.c.b16.end [4/4] (short) (narrow) %v3596_v11, 16 }
 0x73f   :  { %v1928_v40 = vpop.xlane.xlu1 %1927 }
 0x740   :  { %2978 = vrcp.f32 %v1928_v40 }
 0x743   :  { %v1931_v20 = vpop.xlane.xlu0 %1930 }
 0x744   :  { %2980 = vrcp.f32 %v1931_v20  ;;  %v3982_v20 = vmax.f32 %v3486_v23, 0.0  ;;  %v1578_v23 = vmul.f32 %v3738_v43, %v3814_v15 }
 0x74d   :  { %v2979_v35 = vpop.eup %2978 }
 0x74e   :  { %v1958_v18 = vmul.f32 %v2979_v35, %v2963_v0  ;;  %v1571_v0 = vmul.f32 %v3814_v15, %v3728_v32  ;;  %v1603_v35 = vmul.f32 %v3542_v10, %v3982_v20 }
 0x751   :  { %v2981_v30 = vpop.eup %2980 }
 0x752   :  { %v1959_v51 = vmul.f32 %v2981_v30, %v2965_v13 }
 0x754   :  { %v1966_v14 = vpack.c.bf16 %v1959_v51, %v1958_v18  ;;  %v3983_v51 = vmax.f32 %v3489_v4, 0.0  ;;  %v1576_v4 = vmul.f32 %v3814_v15, %v3740_v54 }
 0x756   :  { %2775 = vmatprep.mubr.msk.bf16.mxu1 %vm1237_vm1, %v1966_v14  ;;  %v1601_v14 = vmul.f32 %v3542_v10, %v3983_v51 }
 0x779   :  { %v2725_v60 = vpop.f32.mrf.mxu1 }
 0x77a   :  { %v1582_v63 = vmul.f32 %v2725_v60, %v3816_v52 }
 0x77b   :  { %v1539_v27 = vpop.f32.mrf.mxu1 }
 0x77c   :  { %v1590_v13 = vadd.f32 %v1582_v63, %v1573_v12  ;;  %v1580_v2 = vmul.f32 %v3816_v52, %v1539_v27  ;;  %v3984_v27 = vmax.f32 %v3501_v37, 0.0  ;;  %v3985_v37 = vmax.f32 %v3506_v44, 0.0 }
 0x77d   :  { %v2726_v41 = vpop.f32.mrf.mxu1 }
 0x77e   :  { %v1607_v62 = vadd.f32 %v1599_v25, %v1590_v13  ;;  %v1588_v34 = vadd.f32 %v1580_v2, %v1571_v0  ;;  %v1583_v17 = vmul.f32 %v2726_v41, %v3816_v52  ;;  %v1604_v0 = vmul.f32 %v3542_v10, %v3984_v27  ;;  %v1934_v25 = vpop.xlane.xlu1 %1933 }
 0x77f   :  { %v1542_v32 = vpop.f32.mrf.mxu1 }
 0x780   :  { %1615 = vst.msk [vmem:[#allocation5 + $0x10] sm:$0xff] %vm998_vm0, %v1607_v62  ;;  %v1605_v56 = vadd.f32 %v1597_v33, %v1588_v34  ;;  %v1591_v28 = vadd.f32 %v1583_v17, %v1574_v55  ;;  %v1581_v26 = vmul.f32 %v3816_v52, %v1542_v32  ;;  %v1602_v34 = vmul.f32 %v3542_v10, %v3985_v37 }
 0x781   :  { %v2729_v19 = vpop.f32.mrf.mxu1 }
 0x782   :  { %1613 = vst.msk [vmem:[#allocation5] sm:$0xff] %vm998_vm0, %v1605_v56  ;;  %v1608_v49 = vadd.f32 %v1600_v39, %v1591_v28  ;;  %v1589_v40 = vadd.f32 %v1581_v26, %v1572_v1  ;;  %v1586_v38 = vmul.f32 %v2729_v19, %v3816_v52  ;;  %v1937_v32 = vpop.xlane.xlu1 %1936  ;;  %v1943_v28 = vpop.xlane.xlu0 %1942 }
 0x783   :  { %v1555_v30 = vpop.f32.mrf.mxu1  ;;  %2982 = vrcp.f32 %v1937_v32 }
 0x784   :  { %1616 = vst.msk [vmem:[#allocation5 + $0x18] sm:$0xff] %vm998_vm0, %v1608_v49  ;;  %v1606_v29 = vadd.f32 %v1598_v24, %v1589_v40  ;;  %v1594_v18 = vadd.f32 %v1586_v38, %v1577_v58  ;;  %v1584_v46 = vmul.f32 %v3816_v52, %v1555_v30  ;;  %2984 = vrcp.f32 %v1943_v28 }
 0x785   :  { %v2730_v60 = vpop.f32.mrf.mxu1  ;;  %2986 = vrcp.f32 %v1934_v25  ;;  %v3986_v25 = vmov 0.0  }
 0x786   :  { %1614 = vst.msk [vmem:[#allocation5 + $0x8] sm:$0xff] %vm998_vm0, %v1606_v29  ;;  %v1611_v12 = vadd.f32 %v1603_v35, %v1594_v18  ;;  %v1592_v63 = vadd.f32 %v1584_v46, %v1575_v47  ;;  %v1587_v57 = vmul.f32 %v2730_v60, %v3816_v52  ;;  %v1940_v24 = vpop.xlane.xlu1 %1939  ;;  %v1949_v20 = vpop.xlane.xlu0 %1948 }
 0x787   :  { %v1558_v13 = vpop.f32.mrf.mxu1  ;;  %2988 = vrcp.f32 %v1940_v24 }
 0x788   :  { %1619 = vst.msk [vmem:[#allocation5 + $0x30] sm:$0xff] %vm998_vm0, %v1611_v12  ;;  %v1609_v2 = vadd.f32 %v1601_v14, %v1592_v63  ;;  %v1595_v33 = vadd.f32 %v1587_v57, %v1578_v23  ;;  %v1585_v43 = vmul.f32 %v3816_v52, %v1558_v13  ;;  %2990 = vrcp.f32 %v1949_v20 }
 0x789   :  { %v2745_v41 = vpop.f32.mrf.mxu1 }
 0x78a   :  { %1617 = vst.msk [vmem:[#allocation5 + $0x20] sm:$0xff] %vm998_vm0, %v1609_v2  ;;  %v1612_v55 = vadd.f32 %v1604_v0, %v1595_v33  ;;  %v1593_v62 = vadd.f32 %v1585_v43, %v1576_v4  ;;  %v1946_v47 = vpop.xlane.xlu1 %1945  ;;  %v1775_v29 = vadd.f32 %v2745_v41, %v3641_v50 }
 0x78b   :  { %v1766_v17 = vpop.f32.mrf.mxu1  ;;  %2992 = vrcp.f32 %v1946_v47 }
 0x78c   :  { %1620 = vst.msk [vmem:[#allocation5 + $0x38] sm:$0xff] %vm998_vm0, %v1612_v55  ;;  %v1610_v54 = vadd.f32 %v1602_v34, %v1593_v62  ;;  %v1767_v51 = vadd.f32 %v3641_v50, %v1766_v17 }
 0x78d   :  { %v2746_v39 = vpop.f32.mrf.mxu1 }
 0x78e   :  { %1618 = vst.msk [vmem:[#allocation5 + $0x28] sm:$0xff] %vm998_vm0, %v1610_v54  ;;  %v1778_v35 = vadd.f32 %v2746_v39, %v3641_v50 }
 0x78f   :  { %v1769_v1 = vpop.f32.mrf.mxu1 }
 0x790   :  { %v1971_v18 = vpack.c.bf16 %v1778_v35, %v1775_v29  ;;  %v1770_v46 = vadd.f32 %v3641_v50, %v1769_v1  ;;  %v2983_v14 = vpop.eup %2982 }
 0x791   :  { %v2749_v56 = vpop.f32.mrf.mxu1  ;;  %v2985_v60 = vpop.eup %2984  ;;  %v1961_v57 = vmul.f32 %v2983_v14, %v3779_v22 }
 0x792   :  { %v1791_v44 = vadd.f32 %v2749_v56, %v3641_v50  ;;  %v1970_v23 = vpack.c.bf16 %v1770_v46, %v1767_v51  ;;  %v2987_v12 = vpop.eup %2986  ;;  %v1963_v27 = vmul.f32 %v2985_v60, %v3791_v36  ;;  %v2059_v36 = vpop.trf.xlu1 }
 0x793   :  { %v1782_v26 = vpop.f32.mrf.mxu1  ;;  %v1960_v0 = vmul.f32 %v2987_v12, %v3774_v42 }
 0x794   :  { %v1783_v49 = vadd.f32 %v3641_v50, %v1782_v26  ;;  %v2989_v63 = vpop.eup %2988 }
 0x795   :  { %v2750_v19 = vpop.f32.mrf.mxu1  ;;  %v1962_v13 = vmul.f32 %v2989_v63, %v3787_v8  ;;  %v1967_v4 = vpack.c.bf16 %v1961_v57, %v1960_v0 }
 0x796   :  { %v1794_v10 = vadd.f32 %v2750_v19, %v3641_v50 }
 0x797   :  { %v1785_v58 = vpop.f32.mrf.mxu1  ;;  %v1968_v2 = vpack.c.bf16 %v1963_v27, %v1962_v13 }
 0x798   :  { %v1973_v40 = vpack.c.bf16 %v1794_v10, %v1791_v44  ;;  %v1786_v38 = vadd.f32 %v3641_v50, %v1785_v58  ;;  %v2991_v50 = vpop.eup %2990 }
 0x799   :  { %v2993_v33 = vpop.eup %2992  ;;  %v1965_v22 = vmul.f32 %v2991_v50, %v3803_v5 }
 0x79a   :  { %v1972_v30 = vpack.c.bf16 %v1786_v38, %v1783_v49  ;;  %2767 = vmatprep.subr.bf16.mxu1 %v1973_v40  ;;  %v1964_v42 = vmul.f32 %v2993_v33, %v3799_v3 }
 0x79b   :  { %2768 = vmatpush3.bf16.msra.mxu1 %v1973_v40 }
 0x79c   :  { %2769 = vmatprep.subr.bf16.mxu1 %v1972_v30  ;;  %v1969_v8 = vpack.c.bf16 %v1965_v22, %v1964_v42 }
 0x79f   :  { %2770 = vmatpush3.bf16.msra.mxu1 %v1972_v30 }
 0x7a0   :  { %2771 = vmatprep.subr.bf16.mxu1 %v1971_v18 }
 0x7a3   :  { %2772 = vmatpush3.bf16.msra.mxu1 %v1971_v18 }
 0x7a4   :  { %2773 = vmatprep.subr.bf16.mxu1 %v1970_v23 }
 0x7a7   :  { %2774 = vmatpush3.bf16.msra.mxu1 %v1970_v23 }
 0x7a8   :  { %2783 = vmatprep.subr.bf16.mxu1 %v3986_v25 }
 0x7aa   :  { %2776 = vmatmul.mubr.msk.bf16.vlgmr.msra.gmra.mxu1 %vm1237_vm1, %v1967_v4 }
 0x7ab   :  { %2779 = vmatprep.mubr.msk.bf16.mxu1 %vm1237_vm1, %v1968_v2  ;;  %2784 = vmatpush3.bf16.msra.mxu1 %v3596_v11 }
 0x7ac   :  { %2785 = vmatprep.subr.bf16.mxu1 %v3986_v25 }
 0x7af   :  { %2786 = vmatpush3.bf16.msra.mxu1 %v3601_v7 }
 0x7b0   :  { %2787 = vmatprep.subr.bf16.mxu1 %v3986_v25 }
 0x7b2   :  { %2780 = vmatmul.mubr.msk.bf16.gmra.mxu1 %vm1237_vm1, %v1969_v8 }
 0x7b3   :  { %2788 = vmatpush3.bf16.msra.mxu1 %v3565_v21  ;;  %2791 = vmatprep.mubr.msk.bf16.mxu1 %vm3040_vm2, %v3986_v25 }
 0x7b4   :  { %2789 = vmatprep.subr.bf16.mxu1 %v3986_v25 }
 0x7b7   :  { %2790 = vmatpush3.bf16.msra.mxu1 %v3574_v53 }
 0x7ba   :  { %2792 = vmatmul.mubr.msk.bf16.vlgmr.msra.gmra.mxu1 %vm1237_vm1, %v2059_v36 }
 0x86a   :  { %v2777_v3 = vpop.f32.mrf.mxu1 }
 0x86b   :  { %v2212_v27 = vmul.f32 %v2777_v3, %v3814_v15 }
 0x86c   :  { %v2020_v5 = vpop.f32.mrf.mxu1 }
 0x86d   :  { %v2210_v4 = vmul.f32 %v2020_v5, %v3814_v15 }
 0x86e   :  { %v2778_v43 = vpop.f32.mrf.mxu1 }
 0x870   :  { %v3902_v41 = vpop.f32.mrf.mxu1 }
 0x871   :  { %v2211_v42 = vmul.f32 %v3902_v41, %v3814_v15 }
 0x872   :  { %v3904_v55 = vpop.f32.mrf.mxu1 }
 0x874   :  { %v3906_v62 = vpop.f32.mrf.mxu1 }
 0x875   :  { %v2214_v41 = vmul.f32 %v3906_v62, %v3814_v15 }
 0x876   :  { %v3908_v37 = vpop.f32.mrf.mxu1 }
 0x878   :  { %v3910_v34 = vpop.f32.mrf.mxu1 }
 0x879   :  { %v2215_v62 = vmul.f32 %v3910_v34, %v3814_v15 }
 0x87a   :  { %v2104_v17 = vpop.f32.mrf.mxu1 }
 0x87b   :  { %v2111_v54 = vsel %vm998_vm0, %v2104_v17, -inf }
 0x87c   :  { %2112 = vmax.xlane.f32.xlu0 %v2111_v54  ;;  %v2793_v53 = vpop.f32.mrf.mxu1 }
 0x87e   :  { %v2107_v39 = vpop.f32.mrf.mxu1 }
 0x87f   :  { %v2114_v32 = vsel %vm998_vm0, %v2107_v39, -inf }
 0x880   :  { %2115 = vmax.xlane.f32.xlu0 %v2114_v32  ;;  %v2794_v1 = vpop.f32.mrf.mxu1 }
 0x905   :  { %v2113_v56 = vpop.xlane.xlu0 %2112 }
 0x906   :  { %v2117_v28 = vsub.f32 %v2113_v56, %v2104_v17 }
 0x908   :  { %v2119_v26 = vsel %vm998_vm0, %v2117_v28, -inf }
 0x909   :  { %2120 = vmax.xlane.f32.xlu0 %v2119_v26  ;;  %v2116_v24 = vpop.xlane.xlu0 %2115 }
 0x90a   :  { %v2118_v19 = vsub.f32 %v2116_v24, %v2107_v39 }
 0x90c   :  { %v2122_v44 = vsel %vm998_vm0, %v2118_v19, -inf }
 0x90d   :  { %2123 = vmax.xlane.f32.xlu0 %v2122_v44 }
 0x992   :  { %v2121_v10 = vpop.xlane.xlu0 %2120 }
 0x993   :  { %v2125_v58 = vsub.f32 %v2117_v28, %v2121_v10 }
 0x995   :  { %v2127_v49 = vmul.f32 1.442695, %v2125_v58 }
 0x996   :  { %v2124_v40 = vpop.xlane.xlu0 %2123 }
 0x997   :  { %2994 = vpow2.f32 %v2127_v49  ;;  %v2126_v38 = vsub.f32 %v2118_v19, %v2124_v40 }
 0x999   :  { %v2129_v20 = vmul.f32 1.442695, %v2126_v38 }
 0x99b   :  { %2996 = vpow2.f32 %v2129_v20 }
 0x9a4   :  { %v2995_v35 = vpop.eup %2994 }
 0x9a5   :  { %v2131_v30 = vsel %vm998_vm0, %v2995_v35, 0.0 }
 0x9a6   :  { %2132 = vadd.xlane.f32.xlu0 %v2131_v30 }
 0x9a8   :  { %v2997_v47 = vpop.eup %2996 }
 0x9a9   :  { %v2134_v29 = vsel %vm998_vm0, %v2997_v47, 0.0 }
 0x9aa   :  { %2135 = vadd.xlane.f32.xlu0 %v2134_v29 }
 0xa2f   :  { %v2133_v18 = vpop.xlane.xlu0 %2132 }
 0xa30   :  { %2998 = vrcp.f32 %v2133_v18 }
 0xa33   :  { %v2136_v46 = vpop.xlane.xlu0 %2135 }
 0xa34   :  { %3000 = vrcp.f32 %v2136_v46 }
 0xa3d   :  { %v2999_v51 = vpop.eup %2998 }
 0xa3e   :  { %v2139_v60 = vmul.f32 %v2999_v51, %v2995_v35 }
 0xa41   :  { %v3001_v14 = vpop.eup %3000 }
 0xa42   :  { %v2140_v23 = vmul.f32 %v3001_v14, %v2997_v47 }
 0xa44   :  { %v2141_v12 = vpack.c.bf16 %v2140_v23, %v2139_v60 }
 0xa46   :  { %2814 = vmatprep.subr.msk.bf16.mxu0 %vm998_vm0, %v2141_v12  ;;  %v2143_v63 = vsel %vm998_vm0, %v2141_v12, 0 }
 0xa47   :  { %2796 = vmatpush3.bf16.xpose.msra.mxu0 %v2143_v63 }
 0xa4e   :  { %2798 = vmatmul.mubr.msk.bf16.vlgmr.msra.gmra.mxu0 %vm998_vm0, %v3565_v21  ;;  %v2213_v21 = vmul.f32 %v2778_v43, %v3814_v15  ;;  %v2216_v43 = vmul.f32 %v3904_v55, %v3814_v15  ;;  %v2217_v55 = vmul.f32 %v3908_v37, %v3814_v15 }
 0xa4f   :  { %2801 = vmatprep.mubr.msk.bf16.mxu0 %vm998_vm0, %v3601_v7 }
 0xa56   :  { %2802 = vmatmul.mubr.msk.bf16.gmra.mxu0 %vm998_vm0, %v3596_v11 }
 0xb0e   :  { %v2799_v57 = vpop.f32.mrf.mxu0 }
 0xb0f   :  { %v2220_v0 = vmul.f32 %v2799_v57, %v3816_v52 }
 0xb10   :  { %v2179_v13 = vpop.f32.mrf.mxu0 }
 0xb11   :  { %v2228_v25 = vadd.f32 %v2220_v0, %v2212_v27  ;;  %v2218_v50 = vmul.f32 %v2179_v13, %v3816_v52 }
 0xb12   :  { %v2800_v2 = vpop.f32.mrf.mxu0 }
 0xb13   :  { %v2244_v33 = vadd.f32 %v3555_v31, %v2228_v25  ;;  %v2226_v7 = vadd.f32 %v2218_v50, %v2210_v4  ;;  %v2221_v22 = vmul.f32 %v2800_v2, %v3816_v52 }
 0xb14   :  { %v2182_v11 = vpop.f32.mrf.mxu0 }
 0xb15   :  { %2252 = vst.msk [vmem:[#allocation5 + $0x50] sm:$0xff] %vm998_vm0, %v2244_v33  ;;  %v2242_v8 = vadd.f32 %v3561_v9, %v2226_v7  ;;  %v2229_v36 = vadd.f32 %v2221_v22, %v2213_v21  ;;  %v2219_v3 = vmul.f32 %v2182_v11, %v3816_v52 }
 0xb16   :  { %v2803_v5 = vpop.f32.mrf.mxu0 }
 0xb17   :  { %2250 = vst.msk [vmem:[#allocation5 + $0x40] sm:$0xff] %vm998_vm0, %v2242_v8  ;;  %v2245_v31 = vadd.f32 %v3570_v45, %v2229_v36  ;;  %v2227_v17 = vadd.f32 %v2219_v3, %v2211_v42  ;;  %v2224_v54 = vmul.f32 %v2803_v5, %v3816_v52 }
 0xb18   :  { %v2195_v53 = vpop.f32.mrf.mxu0 }
 0xb19   :  { %2253 = vst.msk [vmem:[#allocation5 + $0x58] sm:$0xff] %vm998_vm0, %v2245_v31  ;;  %v2243_v9 = vadd.f32 %v3579_v61, %v2227_v17  ;;  %v2232_v39 = vadd.f32 %v2224_v54, %v2216_v43  ;;  %v2222_v32 = vmul.f32 %v2195_v53, %v3816_v52 }
 0xb1a   :  { %v2804_v1 = vpop.f32.mrf.mxu0 }
 0xb1b   :  { %2251 = vst.msk [vmem:[#allocation5 + $0x48] sm:$0xff] %vm998_vm0, %v2243_v9  ;;  %v2248_v45 = vadd.f32 %v3584_v16, %v2232_v39  ;;  %v2230_v56 = vadd.f32 %v2222_v32, %v2214_v41  ;;  %v2225_v28 = vmul.f32 %v2804_v1, %v3816_v52 }
 0xb1c   :  { %v2198_v26 = vpop.f32.mrf.mxu0 }
 0xb1d   :  { %2256 = vst.msk [vmem:[#allocation5 + $0x70] sm:$0xff] %vm998_vm0, %v2248_v45  ;;  %v2246_v61 = vadd.f32 %v3594_v48, %v2230_v56  ;;  %v2233_v24 = vadd.f32 %v2225_v28, %v2217_v55  ;;  %v2223_v19 = vmul.f32 %v2198_v26, %v3816_v52 }
 0xb1f   :  { %2254 = vst.msk [vmem:[#allocation5 + $0x60] sm:$0xff] %vm998_vm0, %v2246_v61  ;;  %v2249_v16 = vadd.f32 %v3599_v6, %v2233_v24  ;;  %v2231_v37 = vadd.f32 %v2223_v19, %v2215_v62 }
 0xb21   :  { %2257 = vst.msk [vmem:[#allocation5 + $0x78] sm:$0xff] %vm998_vm0, %v2249_v16  ;;  %v2247_v44 = vadd.f32 %v3604_v59, %v2231_v37 }
 0xb23   :  { %2255 = vst.msk [vmem:[#allocation5 + $0x68] sm:$0xff] %vm998_vm0, %v2247_v44 }
 0xb24   :  { %3025 = shalt.err (!%p3022_p9)
}
 0xb25   :  { %s3042_s10 = smov 128   ;;  %s3043_s11 = smov 8  }
 0xb26   :  { %2269 = dma.vmem_to_hbm [thread:$0]  %s2264_s29, 2048, %s3975_s9, [#allocation3], %s3042_s10, %s3042_s10, %s3043_s11  }
 0xb27   :  { %3036 = dma.done.wait [#allocation3], 2048  }
 0xb28   :  { %3037 = vsyncadd [#allocation3], 4294965248 }
 0xb29   :  { %2273 = vsyncpa [#allocation3], 1 }
 0xb2a   :  { %2274 = vsyncpa [#allocation4], 1 }

</bundles_post_ra>
